<compile_context>
chip_gen: v6e
topology: v6e:2x2x1
jax: 0.10.0
libtpu: 0.0.40
codegen_flags: <defaults>
</compile_context>

<pallas_src>
import functools

import jax
import jax.numpy as jnp
from jax import lax
from jax.experimental import pallas as pl
from jax.experimental.pallas import tpu as pltpu

LRELU_SLOPE = 0.01    # nn.LeakyReLU() default negative_slope
BN_EPS = 1e-5
LN_EPS = 1e-5
PADW = 4              # column halo folded into the banded weights (lane padding)
TOPPAD = 8            # sublane-aligned row halo above the interior
BOTPAD = 8            # row halo below the interior
DILATIONS = (1, 2, 1, 4, 1)


# ----------------------------------- kernel ----------------------------------
def _channel_wise_kernel(x_ref, a0_ref, b0_ref, band_ref, s_ref, bb_ref,
                         g_ref, beta_ref, cmask_ref, o_ref, pad_ref, *, H, W, C):
    f32 = jnp.float32
    WC = (W + 2 * PADW) * C

    # Zero only the halo rows (interior rows are fully rewritten every layer).
    # Re-done each grid step so the kernel stays correct when the batch axis is
    # sharded across TensorCores ("parallel").
    pad_ref[0:TOPPAD, :] = jnp.zeros((TOPPAD, WC), f32)
    pad_ref[TOPPAD + H:TOPPAD + H + BOTPAD, :] = jnp.zeros((BOTPAD, WC), f32)

    # ---- stem Conv2d(k=2, s=2): a single lane-dense matmul (im2col folded in A0)
    y0 = jnp.dot(x_ref[...], a0_ref[...], preferred_element_type=f32) + b0_ref[...]

    # ---- one DConv_5 sub-layer: dilated 3x3 conv (3 banded matmuls) + folded BN
    #      (inference mode) + LeakyReLU(0.01)
    def dconv(x_val, l, d):
        pad_ref[TOPPAD:TOPPAD + H, :] = x_val                     # aligned store
        acc = jnp.dot(pad_ref[TOPPAD - d:TOPPAD - d + H, :], band_ref[l, 0],
                      preferred_element_type=f32)
        acc = acc + jnp.dot(x_val, band_ref[l, 1], preferred_element_type=f32)
        acc = acc + jnp.dot(pad_ref[TOPPAD + d:TOPPAD + d + H, :], band_ref[l, 2],
                            preferred_element_type=f32)
        y = acc * s_ref[l] + bb_ref[l]                            # folded BatchNorm
        return jnp.maximum(y, LRELU_SLOPE * y)                    # LeakyReLU(0.01)

    # ---- DConv_5 with its residual connections (all values stay in vregs) ----
    e1 = dconv(y0, 0, DILATIONS[0])
    e2 = dconv(e1, 1, DILATIONS[1]) + y0
    e3 = dconv(e2, 2, DILATIONS[2]) + e1
    e4 = dconv(e3, 3, DILATIONS[3]) + e2
    e5 = dconv(e4, 4, DILATIONS[4]) + e3

    # ---- LayerNorm over (C, H, W) per sample, (C, H, W) affine ----
    inv_n = 1.0 / float(H * W * C)
    mu = jnp.sum(e5, keepdims=True) * inv_n        # halo columns of e5 are zero
    cen = (e5 - mu) * cmask_ref[...]               # mask halo cols for the variance
    var = jnp.sum(cen * cen, keepdims=True) * inv_n
    out = cen * lax.rsqrt(var + LN_EPS) * g_ref[...] + beta_ref[...]
    o_ref[...] = out.astype(o_ref.dtype)           # lane-dense (H, 128) store


# -------------------------------- host wrapper --------------------------------
def channel_wise_forward(x_nchw, packed):
    a0, b0_row, bands, s_row, bb_row, g2d, b2d, cmask = packed
    N, Cin, H_in, W_in = x_nchw.shape
    H, W = H_in // 2, W_in // 2
    Wp = W + 2 * PADW
    WC = bands.shape[-1]
    C = WC // Wp
    XW = 2 * W_in * Cin

    # NCHW -> NHWC, then pair the two input rows feeding each output row so the
    # stride-2 stem conv is one matmul in the kernel (pure reshape, no im2col blowup).
    x_nhwc = jnp.transpose(x_nchw, (0, 2, 3, 1)).astype(jnp.float32)
    x_pairs = x_nhwc.reshape(N, H, XW)

    kernel = functools.partial(_channel_wise_kernel, H=H, W=W, C=C)

    out_flat = pl.pallas_call(
        kernel,
        out_shape=jax.ShapeDtypeStruct((N, H, WC), jnp.float32),
        grid_spec=pltpu.PrefetchScalarGridSpec(
            num_scalar_prefetch=0,
            grid=(N,),
            in_specs=[
                pl.BlockSpec((None, H, XW), lambda n: (n, 0, 0)),       # x_pairs
                pl.BlockSpec((XW, WC), lambda n: (0, 0)),               # A0
                pl.BlockSpec((1, WC), lambda n: (0, 0)),                # b0
                pl.BlockSpec((5, 3, WC, WC), lambda n: (0, 0, 0, 0)),   # banded conv weights
                pl.BlockSpec((5, 1, WC), lambda n: (0, 0, 0)),          # BN scale
                pl.BlockSpec((5, 1, WC), lambda n: (0, 0, 0)),          # BN bias
                pl.BlockSpec((H, WC), lambda n: (0, 0)),                # LN gamma
                pl.BlockSpec((H, WC), lambda n: (0, 0)),                # LN beta
                pl.BlockSpec((1, WC), lambda n: (0, 0)),                # interior col mask
            ],
            out_specs=pl.BlockSpec((None, H, WC), lambda n: (n, 0, 0)),
            scratch_shapes=[
                pltpu.VMEM((TOPPAD + H + BOTPAD, WC), jnp.float32),
            ],
        ),
        compiler_params=pltpu.CompilerParams(
            dimension_semantics=("parallel",)),     # batch is independent -> 2 TCs on v7x
    )(x_pairs, a0, b0_row, bands, s_row, bb_row, g2d, b2d, cmask)

    # lane-dense slab -> NCHW (halo columns are exactly zero; just drop them)
    out = out_flat.reshape(N, H, Wp, C)[:, :, PADW:PADW + W, :]
    return jnp.transpose(out, (0, 3, 1, 2))


# ------------------------- parameter folding / packing ------------------------
def _scatter_weights(m, w):
    """m: (K, I, O) 0/1 mask; w: (K, A, B) -> (I*A, O*B).

    Pure broadcast-multiply + sum over K (at most one K active per (I, O)), so the
    weight values are copied exactly (no matmul rounding)."""
    t = jnp.sum(m[:, :, None, :, None] * w[:, None, :, None, :], axis=0)
    K, I, O = m.shape
    A, B = w.shape[1], w.shape[2]
    return t.reshape(I * A, O * B)


def prepare_params(p, Cin, C, H_in, W_in):
    H, W = H_in // 2, W_in // 2
    Wp = W + 2 * PADW
    f32 = jnp.float32

    wo = jnp.arange(Wp)
    interior = (wo >= PADW) & (wo < PADW + W)

    # ---- stem conv (2x2, stride 2) folded into a (2*W_in*Cin, Wp*C) matrix ----
    win = jnp.arange(W_in)
    kx2 = jnp.arange(2)
    w_out = wo - PADW
    halves = []
    for ky2 in range(2):
        m = (win[None, :, None] == (2 * w_out[None, None, :] + kx2[:, None, None]))
        m = (m & interior[None, None, :]).astype(f32)              # (2, W_in, Wp)
        halves.append(_scatter_weights(m, p["w0"][ky2]))           # (W_in*Cin, Wp*C)
    a0 = jnp.concatenate(halves, axis=0)                           # (2*W_in*Cin, Wp*C)

    def embed_cols(v):   # (..., C) -> (..., Wp*C), zero in the halo columns
        out = jnp.zeros(v.shape[:-1] + (Wp, C), f32)
        out = out.at[..., PADW:PADW + W, :].set(
            jnp.broadcast_to(v[..., None, :], v.shape[:-1] + (W, C)))
        return out.reshape(v.shape[:-1] + (Wp * C,))

    b0_row = embed_cols(p["b0"]).reshape(1, Wp * C)

    # ---- DConv_5: each dilated 3x3 conv row (ky) becomes a banded (Wp*C, Wp*C) matrix
    bands = []
    for l, d in enumerate(DILATIONS):
        shifts = jnp.array([-d, 0, d])
        m = (wo[None, :, None] == (wo[None, None, :] + shifts[:, None, None]))
        m = (m & interior[None, None, :] & interior[None, :, None]).astype(f32)  # (3, wi, wo)
        per_ky = [_scatter_weights(m, p["w"][l][ky]) for ky in range(3)]
        bands.append(jnp.stack(per_ky))
    bands = jnp.stack(bands)                                        # (5, 3, Wp*C, Wp*C)

    # ---- fold BatchNorm (inference / running stats) into per-channel scale & bias
    scale = jnp.stack([p["gamma"][i] / jnp.sqrt(p["var"][i] + BN_EPS) for i in range(5)])
    bias = jnp.stack([scale[i] * (p["cb"][i] - p["mean"][i]) + p["beta"][i]
                      for i in range(5)])
    s_row = embed_cols(scale).reshape(5, 1, Wp * C)
    bb_row = embed_cols(bias).reshape(5, 1, Wp * C)

    # ---- LayerNorm affine (C, H, W) -> lane-dense (H, Wp*C) slabs; interior mask ----
    def embed_chw(a):
        out = jnp.zeros((H, Wp, C), f32)
        out = out.at[:, PADW:PADW + W, :].set(jnp.transpose(a, (1, 2, 0)))
        return out.reshape(H, Wp * C)

    g2d = embed_chw(p["ln_g"])
    b2d = embed_chw(p["ln_b"])
    cmask = embed_cols(jnp.ones((C,), f32)).reshape(1, Wp * C)

    return (a0, b0_row, bands, s_row, bb_row, g2d, b2d, cmask)


# ---------------------- deterministic parameter init -------------------------
def init_raw_params(key, cin, c, H, W):
    ks = iter(jax.random.split(key, 34))
    p = {
        "w0": 0.2 * jax.random.normal(next(ks), (2, 2, cin, c), jnp.float32),
        "b0": 0.1 * jax.random.normal(next(ks), (c,), jnp.float32),
        "w": [], "cb": [], "gamma": [], "beta": [], "mean": [], "var": [],
    }
    for _ in range(5):
        p["w"].append(0.1 * jax.random.normal(next(ks), (3, 3, c, c), jnp.float32))
        p["cb"].append(0.1 * jax.random.normal(next(ks), (c,), jnp.float32))
        p["gamma"].append(1.0 + 0.1 * jax.random.normal(next(ks), (c,), jnp.float32))
        p["beta"].append(0.1 * jax.random.normal(next(ks), (c,), jnp.float32))
        p["mean"].append(0.1 * jax.random.normal(next(ks), (c,), jnp.float32))
        p["var"].append(0.5 + jnp.abs(jax.random.normal(next(ks), (c,), jnp.float32)))
    p["ln_g"] = 1.0 + 0.1 * jax.random.normal(next(ks), (c, H, W), jnp.float32)
    p["ln_b"] = 0.1 * jax.random.normal(next(ks), (c, H, W), jnp.float32)
    return p


# --------------------------- pure-JAX reference -------------------------------
def reference_nchw(x_nchw, p, precision):
    dn = ("NHWC", "HWIO", "NHWC")
    x = jnp.transpose(x_nchw, (0, 2, 3, 1))
    y0 = lax.conv_general_dilated(x, p["w0"], (2, 2), "VALID",
                                  dimension_numbers=dn, precision=precision) + p["b0"]

    def layer(z, i, d):
        y = lax.conv_general_dilated(z, p["w"][i], (1, 1), [(d, d), (d, d)],
                                     rhs_dilation=(d, d), dimension_numbers=dn,
                                     precision=precision) + p["cb"][i]
        y = p["gamma"][i] * (y - p["mean"][i]) / jnp.sqrt(p["var"][i] + BN_EPS) + p["beta"][i]
        return jnp.maximum(y, LRELU_SLOPE * y)

    e1 = layer(y0, 0, 1)
    e2 = layer(e1, 1, 2) + y0
    e3 = layer(e2, 2, 1) + e1
    e4 = layer(e3, 3, 4) + e2
    e5 = layer(e4, 4, 1) + e3

    # LayerNorm over (C, H, W) per sample with (C, H, W) affine
    mu = jnp.mean(e5, axis=(1, 2, 3), keepdims=True)
    var = jnp.mean((e5 - mu) ** 2, axis=(1, 2, 3), keepdims=True)
    g = jnp.transpose(p["ln_g"], (1, 2, 0))[None]
    b = jnp.transpose(p["ln_b"], (1, 2, 0))[None]
    y = (e5 - mu) / jnp.sqrt(var + LN_EPS) * g + b
    return jnp.transpose(y, (0, 3, 1, 2))


if __name__ == "__main__":
    N, Cin, H_in, W_in = 2, 4, 16, 16
    C = 8
    H, W = H_in // 2, W_in // 2

    key = jax.random.PRNGKey(0)
    kx_, kp_ = jax.random.split(key)
    x = jax.random.normal(kx_, (N, Cin, H_in, W_in), jnp.float32)

    raw = init_raw_params(kp_, Cin, C, H, W)
    packed = prepare_params(raw, Cin, C, H_in, W_in)

    out = jax.jit(channel_wise_forward)(x, packed)
    out = jax.block_until_ready(out)

    assert out.shape == (N, C, H, W), out.shape
    assert bool(jnp.all(jnp.isfinite(out)))

    ref_hi = reference_nchw(x, raw, lax.Precision.HIGHEST)
    ref_lo = reference_nchw(x, raw, lax.Precision.DEFAULT)
    ref_gap = float(jnp.max(jnp.abs(ref_hi - ref_lo)))   # matmul-precision noise floor
    max_err = float(jnp.max(jnp.abs(out - ref_hi)))
    tol = max(5e-4, 10.0 * ref_gap)
    assert max_err < tol, f"max abs err {max_err} (tol {tol})"

    print("KERNEL_OK")
</pallas_src>

<mosaic_0001>
module attributes {stable_mosaic.version = 11 : i64} {
  func.func @_channel_wise_kernel(%arg0: i32, %arg1: memref<1x8x128xf32, #tpu.memory_space<vmem>>, %arg2: memref<128x128xf32, #tpu.memory_space<vmem>>, %arg3: memref<1x128xf32, #tpu.memory_space<vmem>>, %arg4: memref<5x3x128x128xf32, #tpu.memory_space<vmem>>, %arg5: memref<5x1x128xf32, #tpu.memory_space<vmem>>, %arg6: memref<5x1x128xf32, #tpu.memory_space<vmem>>, %arg7: memref<8x128xf32, #tpu.memory_space<vmem>>, %arg8: memref<8x128xf32, #tpu.memory_space<vmem>>, %arg9: memref<1x128xf32, #tpu.memory_space<vmem>>, %arg10: memref<1x8x128xf32, #tpu.memory_space<vmem>>, %arg11: memref<24x128xf32, #tpu.memory_space<vmem>>) attributes {dimension_semantics = [#tpu.dimension_semantics<parallel>], iteration_bounds = array<i64: 2>, scalar_prefetch = 0 : i64, scratch_operands = 1 : i64, tpu.core_type = #tpu.core_type<tc>, window_params = [{transform_indices = @transform_0, window_bounds = array<i64: 1, 8, 128>}, {pipeline_mode = #tpu.pipeline_mode<synchronous>, transform_indices = @transform_1, window_bounds = array<i64: 128, 128>}, {pipeline_mode = #tpu.pipeline_mode<synchronous>, transform_indices = @transform_2, window_bounds = array<i64: 1, 128>}, {pipeline_mode = #tpu.pipeline_mode<synchronous>, transform_indices = @transform_3, window_bounds = array<i64: 5, 3, 128, 128>}, {pipeline_mode = #tpu.pipeline_mode<synchronous>, transform_indices = @transform_4, window_bounds = array<i64: 5, 1, 128>}, {pipeline_mode = #tpu.pipeline_mode<synchronous>, transform_indices = @transform_5, window_bounds = array<i64: 5, 1, 128>}, {pipeline_mode = #tpu.pipeline_mode<synchronous>, transform_indices = @transform_6, window_bounds = array<i64: 8, 128>}, {pipeline_mode = #tpu.pipeline_mode<synchronous>, transform_indices = @transform_7, window_bounds = array<i64: 8, 128>}, {pipeline_mode = #tpu.pipeline_mode<synchronous>, transform_indices = @transform_8, window_bounds = array<i64: 1, 128>}, {transform_indices = @transform_9, window_bounds = array<i64: 1, 8, 128>}]} {
    %cst = arith.constant 0.000000e+00 : f32
    %0 = vector.broadcast %cst : f32 to vector<8x128xf32>
    %c0 = arith.constant 0 : index
    %c0_0 = arith.constant 0 : index
    %1 = vector.load %arg11[%c0, %c0_0] : memref<24x128xf32, #tpu.memory_space<vmem>>, vector<8x128xf32>
    tpu.vector_store %arg11[%c0, %c0_0], %0 {strides = array<i32>} : memref<24x128xf32, #tpu.memory_space<vmem>>, vector<8x128xf32>,
    %cst_1 = arith.constant 0.000000e+00 : f32
    %2 = vector.broadcast %cst_1 : f32 to vector<8x128xf32>
    %c16 = arith.constant 16 : index
    %c0_2 = arith.constant 0 : index
    %3 = vector.load %arg11[%c16, %c0_2] : memref<24x128xf32, #tpu.memory_space<vmem>>, vector<8x128xf32>
    tpu.vector_store %arg11[%c16, %c0_2], %2 {strides = array<i32>} : memref<24x128xf32, #tpu.memory_space<vmem>>, vector<8x128xf32>,
    %c0_3 = arith.constant 0 : index
    %c0_4 = arith.constant 0 : index
    %c0_5 = arith.constant 0 : index
    %4 = vector.load %arg1[%c0_3, %c0_4, %c0_5] : memref<1x8x128xf32, #tpu.memory_space<vmem>>, vector<1x8x128xf32>
    %5 = vector.shape_cast %4 : vector<1x8x128xf32> to vector<8x128xf32>
    %c0_6 = arith.constant 0 : index
    %c0_7 = arith.constant 0 : index
    %6 = vector.load %arg2[%c0_6, %c0_7] : memref<128x128xf32, #tpu.memory_space<vmem>>, vector<128x128xf32>
    %cst_8 = arith.constant dense<0.000000e+00> : vector<8x128xf32>
    %7 = tpu.matmul %5, %6, %cst_8 {dimension_numbers = #tpu.dot_dimension_numbers<[1], [0], [0], [1], [0, 0, 1, 1], [], []>} : vector<8x128xf32>, vector<128x128xf32>, vector<8x128xf32> -> vector<8x128xf32>
    %c0_9 = arith.constant 0 : index
    %c0_10 = arith.constant 0 : index
    %8 = vector.load %arg3[%c0_9, %c0_10] : memref<1x128xf32, #tpu.memory_space<vmem>>, vector<1x128xf32>
    %9 = vector.broadcast %8 : vector<1x128xf32> to vector<8x128xf32>
    %10 = arith.addf %7, %9 : vector<8x128xf32>
    %c8 = arith.constant 8 : index
    %c0_11 = arith.constant 0 : index
    %11 = vector.load %arg11[%c8, %c0_11] : memref<24x128xf32, #tpu.memory_space<vmem>>, vector<8x128xf32>
    tpu.vector_store %arg11[%c8, %c0_11], %10 {strides = array<i32>} : memref<24x128xf32, #tpu.memory_space<vmem>>, vector<8x128xf32>,
    %c7 = arith.constant 7 : index
    %c0_12 = arith.constant 0 : index
    %12 = vector.load %arg11[%c7, %c0_12] : memref<24x128xf32, #tpu.memory_space<vmem>>, vector<8x128xf32>
    %c0_13 = arith.constant 0 : index
    %c0_14 = arith.constant 0 : index
    %c0_15 = arith.constant 0 : index
    %c0_16 = arith.constant 0 : index
    %13 = vector.load %arg4[%c0_13, %c0_14, %c0_15, %c0_16] : memref<5x3x128x128xf32, #tpu.memory_space<vmem>>, vector<1x1x128x128xf32>
    %14 = vector.shape_cast %13 : vector<1x1x128x128xf32> to vector<128x128xf32>
    %cst_17 = arith.constant dense<0.000000e+00> : vector<8x128xf32>
    %15 = tpu.matmul %12, %14, %cst_17 {dimension_numbers = #tpu.dot_dimension_numbers<[1], [0], [0], [1], [0, 0, 1, 1], [], []>} : vector<8x128xf32>, vector<128x128xf32>, vector<8x128xf32> -> vector<8x128xf32>
    %c0_18 = arith.constant 0 : index
    %c1 = arith.constant 1 : index
    %c0_19 = arith.constant 0 : index
    %c0_20 = arith.constant 0 : index
    %16 = vector.load %arg4[%c0_18, %c1, %c0_19, %c0_20] : memref<5x3x128x128xf32, #tpu.memory_space<vmem>>, vector<1x1x128x128xf32>
    %17 = vector.shape_cast %16 : vector<1x1x128x128xf32> to vector<128x128xf32>
    %cst_21 = arith.constant dense<0.000000e+00> : vector<8x128xf32>
    %18 = tpu.matmul %10, %17, %cst_21 {dimension_numbers = #tpu.dot_dimension_numbers<[1], [0], [0], [1], [0, 0, 1, 1], [], []>} : vector<8x128xf32>, vector<128x128xf32>, vector<8x128xf32> -> vector<8x128xf32>
    %19 = arith.addf %15, %18 : vector<8x128xf32>
    %c9 = arith.constant 9 : index
    %c0_22 = arith.constant 0 : index
    %20 = vector.load %arg11[%c9, %c0_22] : memref<24x128xf32, #tpu.memory_space<vmem>>, vector<8x128xf32>
    %c0_23 = arith.constant 0 : index
    %c2 = arith.constant 2 : index
    %c0_24 = arith.constant 0 : index
    %c0_25 = arith.constant 0 : index
    %21 = vector.load %arg4[%c0_23, %c2, %c0_24, %c0_25] : memref<5x3x128x128xf32, #tpu.memory_space<vmem>>, vector<1x1x128x128xf32>
    %22 = vector.shape_cast %21 : vector<1x1x128x128xf32> to vector<128x128xf32>
    %cst_26 = arith.constant dense<0.000000e+00> : vector<8x128xf32>
    %23 = tpu.matmul %20, %22, %cst_26 {dimension_numbers = #tpu.dot_dimension_numbers<[1], [0], [0], [1], [0, 0, 1, 1], [], []>} : vector<8x128xf32>, vector<128x128xf32>, vector<8x128xf32> -> vector<8x128xf32>
    %24 = arith.addf %19, %23 : vector<8x128xf32>
    %c0_27 = arith.constant 0 : index
    %c0_28 = arith.constant 0 : index
    %c0_29 = arith.constant 0 : index
    %25 = vector.load %arg5[%c0_27, %c0_28, %c0_29] : memref<5x1x128xf32, #tpu.memory_space<vmem>>, vector<1x1x128xf32>
    %26 = vector.shape_cast %25 : vector<1x1x128xf32> to vector<1x128xf32>
    %27 = vector.broadcast %26 : vector<1x128xf32> to vector<8x128xf32>
    %28 = arith.mulf %24, %27 : vector<8x128xf32>
    %c0_30 = arith.constant 0 : index
    %c0_31 = arith.constant 0 : index
    %c0_32 = arith.constant 0 : index
    %29 = vector.load %arg6[%c0_30, %c0_31, %c0_32] : memref<5x1x128xf32, #tpu.memory_space<vmem>>, vector<1x1x128xf32>
    %30 = vector.shape_cast %29 : vector<1x1x128xf32> to vector<1x128xf32>
    %31 = vector.broadcast %30 : vector<1x128xf32> to vector<8x128xf32>
    %32 = arith.addf %28, %31 : vector<8x128xf32>
    %cst_33 = arith.constant 0.00999999977 : f32
    %33 = vector.broadcast %cst_33 : f32 to vector<8x128xf32>
    %34 = arith.mulf %33, %32 : vector<8x128xf32>
    %35 = arith.maximumf %32, %34 : vector<8x128xf32>
    %c8_34 = arith.constant 8 : index
    %c0_35 = arith.constant 0 : index
    %36 = vector.load %arg11[%c8_34, %c0_35] : memref<24x128xf32, #tpu.memory_space<vmem>>, vector<8x128xf32>
    tpu.vector_store %arg11[%c8_34, %c0_35], %35 {strides = array<i32>} : memref<24x128xf32, #tpu.memory_space<vmem>>, vector<8x128xf32>,
    %c6 = arith.constant 6 : index
    %c0_36 = arith.constant 0 : index
    %37 = vector.load %arg11[%c6, %c0_36] : memref<24x128xf32, #tpu.memory_space<vmem>>, vector<8x128xf32>
    %c1_37 = arith.constant 1 : index
    %c0_38 = arith.constant 0 : index
    %c0_39 = arith.constant 0 : index
    %c0_40 = arith.constant 0 : index
    %38 = vector.load %arg4[%c1_37, %c0_38, %c0_39, %c0_40] : memref<5x3x128x128xf32, #tpu.memory_space<vmem>>, vector<1x1x128x128xf32>
    %39 = vector.shape_cast %38 : vector<1x1x128x128xf32> to vector<128x128xf32>
    %cst_41 = arith.constant dense<0.000000e+00> : vector<8x128xf32>
    %40 = tpu.matmul %37, %39, %cst_41 {dimension_numbers = #tpu.dot_dimension_numbers<[1], [0], [0], [1], [0, 0, 1, 1], [], []>} : vector<8x128xf32>, vector<128x128xf32>, vector<8x128xf32> -> vector<8x128xf32>
    %c1_42 = arith.constant 1 : index
    %c1_43 = arith.constant 1 : index
    %c0_44 = arith.constant 0 : index
    %c0_45 = arith.constant 0 : index
    %41 = vector.load %arg4[%c1_42, %c1_43, %c0_44, %c0_45] : memref<5x3x128x128xf32, #tpu.memory_space<vmem>>, vector<1x1x128x128xf32>
    %42 = vector.shape_cast %41 : vector<1x1x128x128xf32> to vector<128x128xf32>
    %cst_46 = arith.constant dense<0.000000e+00> : vector<8x128xf32>
    %43 = tpu.matmul %35, %42, %cst_46 {dimension_numbers = #tpu.dot_dimension_numbers<[1], [0], [0], [1], [0, 0, 1, 1], [], []>} : vector<8x128xf32>, vector<128x128xf32>, vector<8x128xf32> -> vector<8x128xf32>
    %44 = arith.addf %40, %43 : vector<8x128xf32>
    %c10 = arith.constant 10 : index
    %c0_47 = arith.constant 0 : index
    %45 = vector.load %arg11[%c10, %c0_47] : memref<24x128xf32, #tpu.memory_space<vmem>>, vector<8x128xf32>
    %c1_48 = arith.constant 1 : index
    %c2_49 = arith.constant 2 : index
    %c0_50 = arith.constant 0 : index
    %c0_51 = arith.constant 0 : index
    %46 = vector.load %arg4[%c1_48, %c2_49, %c0_50, %c0_51] : memref<5x3x128x128xf32, #tpu.memory_space<vmem>>, vector<1x1x128x128xf32>
    %47 = vector.shape_cast %46 : vector<1x1x128x128xf32> to vector<128x128xf32>
    %cst_52 = arith.constant dense<0.000000e+00> : vector<8x128xf32>
    %48 = tpu.matmul %45, %47, %cst_52 {dimension_numbers = #tpu.dot_dimension_numbers<[1], [0], [0], [1], [0, 0, 1, 1], [], []>} : vector<8x128xf32>, vector<128x128xf32>, vector<8x128xf32> -> vector<8x128xf32>
    %49 = arith.addf %44, %48 : vector<8x128xf32>
    %c1_53 = arith.constant 1 : index
    %c0_54 = arith.constant 0 : index
    %c0_55 = arith.constant 0 : index
    %50 = vector.load %arg5[%c1_53, %c0_54, %c0_55] : memref<5x1x128xf32, #tpu.memory_space<vmem>>, vector<1x1x128xf32>
    %51 = vector.shape_cast %50 : vector<1x1x128xf32> to vector<1x128xf32>
    %52 = vector.broadcast %51 : vector<1x128xf32> to vector<8x128xf32>
    %53 = arith.mulf %49, %52 : vector<8x128xf32>
    %c1_56 = arith.constant 1 : index
    %c0_57 = arith.constant 0 : index
    %c0_58 = arith.constant 0 : index
    %54 = vector.load %arg6[%c1_56, %c0_57, %c0_58] : memref<5x1x128xf32, #tpu.memory_space<vmem>>, vector<1x1x128xf32>
    %55 = vector.shape_cast %54 : vector<1x1x128xf32> to vector<1x128xf32>
    %56 = vector.broadcast %55 : vector<1x128xf32> to vector<8x128xf32>
    %57 = arith.addf %53, %56 : vector<8x128xf32>
    %cst_59 = arith.constant 0.00999999977 : f32
    %58 = vector.broadcast %cst_59 : f32 to vector<8x128xf32>
    %59 = arith.mulf %58, %57 : vector<8x128xf32>
    %60 = arith.maximumf %57, %59 : vector<8x128xf32>
    %61 = arith.addf %60, %10 : vector<8x128xf32>
    %c8_60 = arith.constant 8 : index
    %c0_61 = arith.constant 0 : index
    %62 = vector.load %arg11[%c8_60, %c0_61] : memref<24x128xf32, #tpu.memory_space<vmem>>, vector<8x128xf32>
    tpu.vector_store %arg11[%c8_60, %c0_61], %61 {strides = array<i32>} : memref<24x128xf32, #tpu.memory_space<vmem>>, vector<8x128xf32>,
    %c7_62 = arith.constant 7 : index
    %c0_63 = arith.constant 0 : index
    %63 = vector.load %arg11[%c7_62, %c0_63] : memref<24x128xf32, #tpu.memory_space<vmem>>, vector<8x128xf32>
    %c2_64 = arith.constant 2 : index
    %c0_65 = arith.constant 0 : index
    %c0_66 = arith.constant 0 : index
    %c0_67 = arith.constant 0 : index
    %64 = vector.load %arg4[%c2_64, %c0_65, %c0_66, %c0_67] : memref<5x3x128x128xf32, #tpu.memory_space<vmem>>, vector<1x1x128x128xf32>
    %65 = vector.shape_cast %64 : vector<1x1x128x128xf32> to vector<128x128xf32>
    %cst_68 = arith.constant dense<0.000000e+00> : vector<8x128xf32>
    %66 = tpu.matmul %63, %65, %cst_68 {dimension_numbers = #tpu.dot_dimension_numbers<[1], [0], [0], [1], [0, 0, 1, 1], [], []>} : vector<8x128xf32>, vector<128x128xf32>, vector<8x128xf32> -> vector<8x128xf32>
    %c2_69 = arith.constant 2 : index
    %c1_70 = arith.constant 1 : index
    %c0_71 = arith.constant 0 : index
    %c0_72 = arith.constant 0 : index
    %67 = vector.load %arg4[%c2_69, %c1_70, %c0_71, %c0_72] : memref<5x3x128x128xf32, #tpu.memory_space<vmem>>, vector<1x1x128x128xf32>
    %68 = vector.shape_cast %67 : vector<1x1x128x128xf32> to vector<128x128xf32>
    %cst_73 = arith.constant dense<0.000000e+00> : vector<8x128xf32>
    %69 = tpu.matmul %61, %68, %cst_73 {dimension_numbers = #tpu.dot_dimension_numbers<[1], [0], [0], [1], [0, 0, 1, 1], [], []>} : vector<8x128xf32>, vector<128x128xf32>, vector<8x128xf32> -> vector<8x128xf32>
    %70 = arith.addf %66, %69 : vector<8x128xf32>
    %c9_74 = arith.constant 9 : index
    %c0_75 = arith.constant 0 : index
    %71 = vector.load %arg11[%c9_74, %c0_75] : memref<24x128xf32, #tpu.memory_space<vmem>>, vector<8x128xf32>
    %c2_76 = arith.constant 2 : index
    %c2_77 = arith.constant 2 : index
    %c0_78 = arith.constant 0 : index
    %c0_79 = arith.constant 0 : index
    %72 = vector.load %arg4[%c2_76, %c2_77, %c0_78, %c0_79] : memref<5x3x128x128xf32, #tpu.memory_space<vmem>>, vector<1x1x128x128xf32>
    %73 = vector.shape_cast %72 : vector<1x1x128x128xf32> to vector<128x128xf32>
    %cst_80 = arith.constant dense<0.000000e+00> : vector<8x128xf32>
    %74 = tpu.matmul %71, %73, %cst_80 {dimension_numbers = #tpu.dot_dimension_numbers<[1], [0], [0], [1], [0, 0, 1, 1], [], []>} : vector<8x128xf32>, vector<128x128xf32>, vector<8x128xf32> -> vector<8x128xf32>
    %75 = arith.addf %70, %74 : vector<8x128xf32>
    %c2_81 = arith.constant 2 : index
    %c0_82 = arith.constant 0 : index
    %c0_83 = arith.constant 0 : index
    %76 = vector.load %arg5[%c2_81, %c0_82, %c0_83] : memref<5x1x128xf32, #tpu.memory_space<vmem>>, vector<1x1x128xf32>
    %77 = vector.shape_cast %76 : vector<1x1x128xf32> to vector<1x128xf32>
    %78 = vector.broadcast %77 : vector<1x128xf32> to vector<8x128xf32>
    %79 = arith.mulf %75, %78 : vector<8x128xf32>
    %c2_84 = arith.constant 2 : index
    %c0_85 = arith.constant 0 : index
    %c0_86 = arith.constant 0 : index
    %80 = vector.load %arg6[%c2_84, %c0_85, %c0_86] : memref<5x1x128xf32, #tpu.memory_space<vmem>>, vector<1x1x128xf32>
    %81 = vector.shape_cast %80 : vector<1x1x128xf32> to vector<1x128xf32>
    %82 = vector.broadcast %81 : vector<1x128xf32> to vector<8x128xf32>
    %83 = arith.addf %79, %82 : vector<8x128xf32>
    %cst_87 = arith.constant 0.00999999977 : f32
    %84 = vector.broadcast %cst_87 : f32 to vector<8x128xf32>
    %85 = arith.mulf %84, %83 : vector<8x128xf32>
    %86 = arith.maximumf %83, %85 : vector<8x128xf32>
    %87 = arith.addf %86, %35 : vector<8x128xf32>
    %c8_88 = arith.constant 8 : index
    %c0_89 = arith.constant 0 : index
    %88 = vector.load %arg11[%c8_88, %c0_89] : memref<24x128xf32, #tpu.memory_space<vmem>>, vector<8x128xf32>
    tpu.vector_store %arg11[%c8_88, %c0_89], %87 {strides = array<i32>} : memref<24x128xf32, #tpu.memory_space<vmem>>, vector<8x128xf32>,
    %c4 = arith.constant 4 : index
    %c0_90 = arith.constant 0 : index
    %89 = vector.load %arg11[%c4, %c0_90] : memref<24x128xf32, #tpu.memory_space<vmem>>, vector<8x128xf32>
    %c3 = arith.constant 3 : index
    %c0_91 = arith.constant 0 : index
    %c0_92 = arith.constant 0 : index
    %c0_93 = arith.constant 0 : index
    %90 = vector.load %arg4[%c3, %c0_91, %c0_92, %c0_93] : memref<5x3x128x128xf32, #tpu.memory_space<vmem>>, vector<1x1x128x128xf32>
    %91 = vector.shape_cast %90 : vector<1x1x128x128xf32> to vector<128x128xf32>
    %cst_94 = arith.constant dense<0.000000e+00> : vector<8x128xf32>
    %92 = tpu.matmul %89, %91, %cst_94 {dimension_numbers = #tpu.dot_dimension_numbers<[1], [0], [0], [1], [0, 0, 1, 1], [], []>} : vector<8x128xf32>, vector<128x128xf32>, vector<8x128xf32> -> vector<8x128xf32>
    %c3_95 = arith.constant 3 : index
    %c1_96 = arith.constant 1 : index
    %c0_97 = arith.constant 0 : index
    %c0_98 = arith.constant 0 : index
    %93 = vector.load %arg4[%c3_95, %c1_96, %c0_97, %c0_98] : memref<5x3x128x128xf32, #tpu.memory_space<vmem>>, vector<1x1x128x128xf32>
    %94 = vector.shape_cast %93 : vector<1x1x128x128xf32> to vector<128x128xf32>
    %cst_99 = arith.constant dense<0.000000e+00> : vector<8x128xf32>
    %95 = tpu.matmul %87, %94, %cst_99 {dimension_numbers = #tpu.dot_dimension_numbers<[1], [0], [0], [1], [0, 0, 1, 1], [], []>} : vector<8x128xf32>, vector<128x128xf32>, vector<8x128xf32> -> vector<8x128xf32>
    %96 = arith.addf %92, %95 : vector<8x128xf32>
    %c12 = arith.constant 12 : index
    %c0_100 = arith.constant 0 : index
    %97 = vector.load %arg11[%c12, %c0_100] : memref<24x128xf32, #tpu.memory_space<vmem>>, vector<8x128xf32>
    %c3_101 = arith.constant 3 : index
    %c2_102 = arith.constant 2 : index
    %c0_103 = arith.constant 0 : index
    %c0_104 = arith.constant 0 : index
    %98 = vector.load %arg4[%c3_101, %c2_102, %c0_103, %c0_104] : memref<5x3x128x128xf32, #tpu.memory_space<vmem>>, vector<1x1x128x128xf32>
    %99 = vector.shape_cast %98 : vector<1x1x128x128xf32> to vector<128x128xf32>
    %cst_105 = arith.constant dense<0.000000e+00> : vector<8x128xf32>
    %100 = tpu.matmul %97, %99, %cst_105 {dimension_numbers = #tpu.dot_dimension_numbers<[1], [0], [0], [1], [0, 0, 1, 1], [], []>} : vector<8x128xf32>, vector<128x128xf32>, vector<8x128xf32> -> vector<8x128xf32>
    %101 = arith.addf %96, %100 : vector<8x128xf32>
    %c3_106 = arith.constant 3 : index
    %c0_107 = arith.constant 0 : index
    %c0_108 = arith.constant 0 : index
    %102 = vector.load %arg5[%c3_106, %c0_107, %c0_108] : memref<5x1x128xf32, #tpu.memory_space<vmem>>, vector<1x1x128xf32>
    %103 = vector.shape_cast %102 : vector<1x1x128xf32> to vector<1x128xf32>
    %104 = vector.broadcast %103 : vector<1x128xf32> to vector<8x128xf32>
    %105 = arith.mulf %101, %104 : vector<8x128xf32>
    %c3_109 = arith.constant 3 : index
    %c0_110 = arith.constant 0 : index
    %c0_111 = arith.constant 0 : index
    %106 = vector.load %arg6[%c3_109, %c0_110, %c0_111] : memref<5x1x128xf32, #tpu.memory_space<vmem>>, vector<1x1x128xf32>
    %107 = vector.shape_cast %106 : vector<1x1x128xf32> to vector<1x128xf32>
    %108 = vector.broadcast %107 : vector<1x128xf32> to vector<8x128xf32>
    %109 = arith.addf %105, %108 : vector<8x128xf32>
    %cst_112 = arith.constant 0.00999999977 : f32
    %110 = vector.broadcast %cst_112 : f32 to vector<8x128xf32>
    %111 = arith.mulf %110, %109 : vector<8x128xf32>
    %112 = arith.maximumf %109, %111 : vector<8x128xf32>
    %113 = arith.addf %112, %61 : vector<8x128xf32>
    %c8_113 = arith.constant 8 : index
    %c0_114 = arith.constant 0 : index
    %114 = vector.load %arg11[%c8_113, %c0_114] : memref<24x128xf32, #tpu.memory_space<vmem>>, vector<8x128xf32>
    tpu.vector_store %arg11[%c8_113, %c0_114], %113 {strides = array<i32>} : memref<24x128xf32, #tpu.memory_space<vmem>>, vector<8x128xf32>,
    %c7_115 = arith.constant 7 : index
    %c0_116 = arith.constant 0 : index
    %115 = vector.load %arg11[%c7_115, %c0_116] : memref<24x128xf32, #tpu.memory_space<vmem>>, vector<8x128xf32>
    %c4_117 = arith.constant 4 : index
    %c0_118 = arith.constant 0 : index
    %c0_119 = arith.constant 0 : index
    %c0_120 = arith.constant 0 : index
    %116 = vector.load %arg4[%c4_117, %c0_118, %c0_119, %c0_120] : memref<5x3x128x128xf32, #tpu.memory_space<vmem>>, vector<1x1x128x128xf32>
    %117 = vector.shape_cast %116 : vector<1x1x128x128xf32> to vector<128x128xf32>
    %cst_121 = arith.constant dense<0.000000e+00> : vector<8x128xf32>
    %118 = tpu.matmul %115, %117, %cst_121 {dimension_numbers = #tpu.dot_dimension_numbers<[1], [0], [0], [1], [0, 0, 1, 1], [], []>} : vector<8x128xf32>, vector<128x128xf32>, vector<8x128xf32> -> vector<8x128xf32>
    %c4_122 = arith.constant 4 : index
    %c1_123 = arith.constant 1 : index
    %c0_124 = arith.constant 0 : index
    %c0_125 = arith.constant 0 : index
    %119 = vector.load %arg4[%c4_122, %c1_123, %c0_124, %c0_125] : memref<5x3x128x128xf32, #tpu.memory_space<vmem>>, vector<1x1x128x128xf32>
    %120 = vector.shape_cast %119 : vector<1x1x128x128xf32> to vector<128x128xf32>
    %cst_126 = arith.constant dense<0.000000e+00> : vector<8x128xf32>
    %121 = tpu.matmul %113, %120, %cst_126 {dimension_numbers = #tpu.dot_dimension_numbers<[1], [0], [0], [1], [0, 0, 1, 1], [], []>} : vector<8x128xf32>, vector<128x128xf32>, vector<8x128xf32> -> vector<8x128xf32>
    %122 = arith.addf %118, %121 : vector<8x128xf32>
    %c9_127 = arith.constant 9 : index
    %c0_128 = arith.constant 0 : index
    %123 = vector.load %arg11[%c9_127, %c0_128] : memref<24x128xf32, #tpu.memory_space<vmem>>, vector<8x128xf32>
    %c4_129 = arith.constant 4 : index
    %c2_130 = arith.constant 2 : index
    %c0_131 = arith.constant 0 : index
    %c0_132 = arith.constant 0 : index
    %124 = vector.load %arg4[%c4_129, %c2_130, %c0_131, %c0_132] : memref<5x3x128x128xf32, #tpu.memory_space<vmem>>, vector<1x1x128x128xf32>
    %125 = vector.shape_cast %124 : vector<1x1x128x128xf32> to vector<128x128xf32>
    %cst_133 = arith.constant dense<0.000000e+00> : vector<8x128xf32>
    %126 = tpu.matmul %123, %125, %cst_133 {dimension_numbers = #tpu.dot_dimension_numbers<[1], [0], [0], [1], [0, 0, 1, 1], [], []>} : vector<8x128xf32>, vector<128x128xf32>, vector<8x128xf32> -> vector<8x128xf32>
    %127 = arith.addf %122, %126 : vector<8x128xf32>
    %c4_134 = arith.constant 4 : index
    %c0_135 = arith.constant 0 : index
    %c0_136 = arith.constant 0 : index
    %128 = vector.load %arg5[%c4_134, %c0_135, %c0_136] : memref<5x1x128xf32, #tpu.memory_space<vmem>>, vector<1x1x128xf32>
    %129 = vector.shape_cast %128 : vector<1x1x128xf32> to vector<1x128xf32>
    %130 = vector.broadcast %129 : vector<1x128xf32> to vector<8x128xf32>
    %131 = arith.mulf %127, %130 : vector<8x128xf32>
    %c4_137 = arith.constant 4 : index
    %c0_138 = arith.constant 0 : index
    %c0_139 = arith.constant 0 : index
    %132 = vector.load %arg6[%c4_137, %c0_138, %c0_139] : memref<5x1x128xf32, #tpu.memory_space<vmem>>, vector<1x1x128xf32>
    %133 = vector.shape_cast %132 : vector<1x1x128xf32> to vector<1x128xf32>
    %134 = vector.broadcast %133 : vector<1x128xf32> to vector<8x128xf32>
    %135 = arith.addf %131, %134 : vector<8x128xf32>
    %cst_140 = arith.constant 0.00999999977 : f32
    %136 = vector.broadcast %cst_140 : f32 to vector<8x128xf32>
    %137 = arith.mulf %136, %135 : vector<8x128xf32>
    %138 = arith.maximumf %135, %137 : vector<8x128xf32>
    %139 = arith.addf %138, %87 : vector<8x128xf32>
    %140 = vector.shape_cast %139 : vector<8x128xf32> to vector<1x8x128xf32>
    %cst_141 = arith.constant dense<0.000000e+00> : vector<1xf32>
    %141 = vector.multi_reduction <add>, %140, %cst_141 [1, 2] : vector<1x8x128xf32> to vector<1xf32>
    %142 = vector.shape_cast %141 : vector<1xf32> to vector<1x1x1xf32>
    %143 = vector.extract %142[0, 0, 0] : f32 from vector<1x1x1xf32>
    %144 = vector.broadcast %143 : f32 to vector<1x1xf32>
    %cst_142 = arith.constant 0.001953125 : f32
    %145 = vector.broadcast %cst_142 : f32 to vector<1x1xf32>
    %146 = arith.mulf %144, %145 : vector<1x1xf32>
    %147 = vector.broadcast %146 : vector<1x1xf32> to vector<8x128xf32>
    %148 = arith.subf %139, %147 : vector<8x128xf32>
    %c0_143 = arith.constant 0 : index
    %c0_144 = arith.constant 0 : index
    %149 = vector.load %arg9[%c0_143, %c0_144] : memref<1x128xf32, #tpu.memory_space<vmem>>, vector<1x128xf32>
    %150 = vector.broadcast %149 : vector<1x128xf32> to vector<8x128xf32>
    %151 = arith.mulf %148, %150 : vector<8x128xf32>
    %152 = arith.mulf %151, %151 : vector<8x128xf32>
    %153 = vector.shape_cast %152 : vector<8x128xf32> to vector<1x8x128xf32>
    %cst_145 = arith.constant dense<0.000000e+00> : vector<1xf32>
    %154 = vector.multi_reduction <add>, %153, %cst_145 [1, 2] : vector<1x8x128xf32> to vector<1xf32>
    %155 = vector.shape_cast %154 : vector<1xf32> to vector<1x1x1xf32>
    %156 = vector.extract %155[0, 0, 0] : f32 from vector<1x1x1xf32>
    %157 = vector.broadcast %156 : f32 to vector<1x1xf32>
    %cst_146 = arith.constant 0.001953125 : f32
    %158 = vector.broadcast %cst_146 : f32 to vector<1x1xf32>
    %159 = arith.mulf %157, %158 : vector<1x1xf32>
    %cst_147 = arith.constant 9.99999974E-6 : f32
    %160 = vector.broadcast %cst_147 : f32 to vector<1x1xf32>
    %161 = arith.addf %159, %160 : vector<1x1xf32>
    %162 = math.rsqrt %161 : vector<1x1xf32>
    %163 = vector.broadcast %162 : vector<1x1xf32> to vector<8x128xf32>
    %164 = arith.mulf %151, %163 : vector<8x128xf32>
    %c0_148 = arith.constant 0 : index
    %c0_149 = arith.constant 0 : index
    %165 = vector.load %arg7[%c0_148, %c0_149] : memref<8x128xf32, #tpu.memory_space<vmem>>, vector<8x128xf32>
    %166 = arith.mulf %164, %165 : vector<8x128xf32>
    %c0_150 = arith.constant 0 : index
    %c0_151 = arith.constant 0 : index
    %167 = vector.load %arg8[%c0_150, %c0_151] : memref<8x128xf32, #tpu.memory_space<vmem>>, vector<8x128xf32>
    %168 = arith.addf %166, %167 : vector<8x128xf32>
    %c0_152 = arith.constant 0 : index
    %c0_153 = arith.constant 0 : index
    %c0_154 = arith.constant 0 : index
    %169 = vector.load %arg10[%c0_152, %c0_153, %c0_154] : memref<1x8x128xf32, #tpu.memory_space<vmem>>, vector<1x8x128xf32>
    %170 = vector.shape_cast %169 : vector<1x8x128xf32> to vector<8x128xf32>
    %171 = vector.shape_cast %168 : vector<8x128xf32> to vector<1x8x128xf32>
    tpu.vector_store %arg10[%c0_152, %c0_153, %c0_154], %171 {strides = array<i32>} : memref<1x8x128xf32, #tpu.memory_space<vmem>>, vector<1x8x128xf32>,
    return
  }
  func.func @transform_0(%arg0: i32) -> (i32, i32, i32) {
    %c0_i32 = arith.constant 0 : i32
    %c0_i32_0 = arith.constant 0 : i32
    %c0_i32_1 = arith.constant 0 : i32
    return %arg0, %c0_i32, %c0_i32_0 : i32, i32, i32
  }
  func.func @transform_1(%arg0: i32) -> (i32, i32) {
    %c0_i32 = arith.constant 0 : i32
    %c0_i32_0 = arith.constant 0 : i32
    %c0_i32_1 = arith.constant 0 : i32
    return %c0_i32, %c0_i32_0 : i32, i32
  }
  func.func @transform_2(%arg0: i32) -> (i32, i32) {
    %c0_i32 = arith.constant 0 : i32
    %c0_i32_0 = arith.constant 0 : i32
    %c0_i32_1 = arith.constant 0 : i32
    return %c0_i32, %c0_i32_0 : i32, i32
  }
  func.func @transform_3(%arg0: i32) -> (i32, i32, i32, i32) {
    %c0_i32 = arith.constant 0 : i32
    %c0_i32_0 = arith.constant 0 : i32
    %c0_i32_1 = arith.constant 0 : i32
    %c0_i32_2 = arith.constant 0 : i32
    %c0_i32_3 = arith.constant 0 : i32
    return %c0_i32, %c0_i32_0, %c0_i32_1, %c0_i32_2 : i32, i32, i32, i32
  }
  func.func @transform_4(%arg0: i32) -> (i32, i32, i32) {
    %c0_i32 = arith.constant 0 : i32
    %c0_i32_0 = arith.constant 0 : i32
    %c0_i32_1 = arith.constant 0 : i32
    %c0_i32_2 = arith.constant 0 : i32
    return %c0_i32, %c0_i32_0, %c0_i32_1 : i32, i32, i32
  }
  func.func @transform_5(%arg0: i32) -> (i32, i32, i32) {
    %c0_i32 = arith.constant 0 : i32
    %c0_i32_0 = arith.constant 0 : i32
    %c0_i32_1 = arith.constant 0 : i32
    %c0_i32_2 = arith.constant 0 : i32
    return %c0_i32, %c0_i32_0, %c0_i32_1 : i32, i32, i32
  }
  func.func @transform_6(%arg0: i32) -> (i32, i32) {
    %c0_i32 = arith.constant 0 : i32
    %c0_i32_0 = arith.constant 0 : i32
    %c0_i32_1 = arith.constant 0 : i32
    return %c0_i32, %c0_i32_0 : i32, i32
  }
  func.func @transform_7(%arg0: i32) -> (i32, i32) {
    %c0_i32 = arith.constant 0 : i32
    %c0_i32_0 = arith.constant 0 : i32
    %c0_i32_1 = arith.constant 0 : i32
    return %c0_i32, %c0_i32_0 : i32, i32
  }
  func.func @transform_8(%arg0: i32) -> (i32, i32) {
    %c0_i32 = arith.constant 0 : i32
    %c0_i32_0 = arith.constant 0 : i32
    %c0_i32_1 = arith.constant 0 : i32
    return %c0_i32, %c0_i32_0 : i32, i32
  }
  func.func @transform_9(%arg0: i32) -> (i32, i32, i32) {
    %c0_i32 = arith.constant 0 : i32
    %c0_i32_0 = arith.constant 0 : i32
    %c0_i32_1 = arith.constant 0 : i32
    return %arg0, %c0_i32, %c0_i32_0 : i32, i32, i32
  }
}

</mosaic_0001>

<bundles_post_ra>
// kernel: channel_wise_forward.1
= control target key start
LH: loop header
LB: loop body
LE: loop exit
PB: predicated region body
PF: predicated region fallthrough
CT: control target
= control target key end

     0   :  { %14 = vsyncpa [#allocation4], 0  ;;  %s2956_s30 = smov 0   ;;  %s3404_s0 = inlined_call_operand.vmem [shape: f32[2,8,128], index: 0, kind: input, shape index: {}]   ;;  %s3405_s1 = inlined_call_operand.vmem [shape: f32[128,128], index: 1, kind: input, shape index: {}]   ;;  %s3406_s2 = inlined_call_operand.vmem [shape: f32[1,128], index: 2, kind: input, shape index: {}]   ;;  %s3407_s3 = inlined_call_operand.hbm [shape: f32[5,3,128,128], index: 3, kind: input, shape index: {}]   ;;  %s3408_s4 = inlined_call_operand.vmem [shape: f32[5,1,128], index: 4, kind: input, shape index: {}]   ;;  %s3409_s5 = inlined_call_operand.vmem [shape: f32[5,1,128], index: 5, kind: input, shape index: {}]   ;;  %s3410_s6 = inlined_call_operand.vmem [shape: f32[8,128], index: 6, kind: input, shape index: {}]   ;;  %s3411_s7 = inlined_call_operand.vmem [shape: f32[8,128], index: 7, kind: input, shape index: {}]   ;;  %s3412_s8 = inlined_call_operand.vmem [shape: f32[1,128], index: 8, kind: input, shape index: {}]   ;;  %s3413_s9 = inlined_call_operand.vmem [shape: f32[2,8,128], index: 9, kind: output, shape index: {}]  }
   0x1 LB: > { %s2962_s10 = sadd.s32 4294967295, %s2899_s30   ;;  %p1972_p0 = scmp.ge.s32.totalorder %s2899_s30, 1  ;;  %s2899_s30 = sphi %s2956_s30, %s20_s30  }
   0x2   : > { %p245_p1 = scmp.lt.s32.totalorder %s2899_s30, 3  ;;  %s2901_s11 = smov [#allocation3]  }
   0x3   : > { %s263_s12 = sshll.u32 %s2901_s11, 4  ;;  %p2845_p3 = scmp.eq.s32.totalorder %s2962_s10, 0  ;;  %s264_s12 = int_to_ptr.vmem [resolvable:$true] %s263_s12 }
   0x4   : > { %p2966_p2 = pnand %p1972_p0, %p245_p1  ;;  %s2874_s14 = scalar_lea.vmem %s264_s12, 30720 }
   0x5   : > { %p2875_p7 = scmp.ne.s32.totalorder %s264_s12, %s2874_s14  ;;  %p2882_p10 = scmp.lt.s32.totalorder %s264_s12, %s264_s12 }
   0x6   : > { %p2841_p4 = pneg %p2966_p2  ;;  %p2883_p11 = scmp.lt.s32.totalorder %s2874_s14, %s2874_s14 }
   0x8   : > { %p2842_p5 = pnand %p2845_p3, %p2841_p4  ;;  %p2884_p12 = por %p2883_p11, %p2882_p10 }
   0xa   : > { %p2865_p6 = pneg %p2842_p5 }
   0xc   : > { %p2877_p8 = pnand %p2875_p7, %p2865_p6 }
   0xe   : > { %p2878_p9 = pneg %p2877_p8 }
  0x10   : > { %p2885_p13 = pnand %p2884_p12, %p2878_p9 }
  0x12   : > { %2888 = shalt.err (!%p2885_p13)
}
  0x13   : > { %s2902_s15 = smov 128   ;;  %s2903_s16 = smov 8  }
  0x14   : > { %2844 = dma.hbm_to_vmem [thread:$0]  (!%p2842_p5), %s3407_s3, 30720, %s264_s12, [#allocation4], %s2902_s15, %s2902_s15, %s2903_s16  }
  0x15   : > { %301 = sbr.rel (%p2966_p2) target bundleno = 1874 (0x752), region = 56 }
  0x1a   : > { %2894 = dma.done.wait (%p2845_p3), [#allocation4], 30720  }
  0x1b   : > { %2896 = vsyncadd (%p2845_p3), [#allocation4], 4294936576  ;;  %v2904_v0 = vmov 0.0   ;;  %vm2905_vm0 = vmmov 0   ;;  %v361_v1 = vld [vmem:[%s3405_s1 + $0x78] sm:$0xff]  ;;  %v360_v2 = vld [vmem:[%s3405_s1 + $0x70] sm:$0xff] }
  0x1c   : > { %2273 = vmatprep.subr.mxu0 %v2904_v0  ;;  %343 = vst [vmem:[#allocation2] sm:$0xff] %v2904_v0  ;;  %344 = vst [vmem:[#allocation2 + $0x10] sm:$0xff] %v2904_v0  ;;  %2305 = vmatprep.mubr.msk.f32.mxu0 %vm2905_vm0, %v2904_v0  ;;  %v359_v3 = vld [vmem:[%s3405_s1 + $0x68] sm:$0xff]  ;;  %v358_v4 = vld [vmem:[%s3405_s1 + $0x60] sm:$0xff]  ;;  %p335_p0 = scmp.lt.s32.totalorder %s2962_s10, 1 }
  0x1d   : > { %2308 = vmatprep.subr.mxu1 %v2904_v0  ;;  %2340 = vmatprep.mubr.msk.f32.mxu1 %vm2905_vm0, %v2904_v0  ;;  %v473_v5 = vld [vmem:[#allocation3 + $0xf8] sm:$0xff]  ;;  %v357_v6 = vld [vmem:[%s3405_s1 + $0x58] sm:$0xff]  ;;  %v472_v7 = vld [vmem:[#allocation3 + $0xf0] sm:$0xff] }
  0x1e   : > { %2274 = vmatpush3.msra.mxu0 %v361_v1  ;;  %2309 = vmatpush3.msra.mxu1 %v473_v5  ;;  %v471_v8 = vld [vmem:[#allocation3 + $0xe8] sm:$0xff]  ;;  %v356_v9 = vld [vmem:[%s3405_s1 + $0x50] sm:$0xff]  ;;  %v470_v10 = vld [vmem:[#allocation3 + $0xe0] sm:$0xff]  ;;  %s3416_s10 = smov (!%p335_p0, %s2962_s10), 1 }
  0x1f   : > { %2275 = vmatprep.subr.mxu0 %v2904_v0  ;;  %2310 = vmatprep.subr.mxu1 %v2904_v0  ;;  %v355_v11 = vld [vmem:[%s3405_s1 + $0x48] sm:$0xff]  ;;  %v469_v12 = vld [vmem:[#allocation3 + $0xd8] sm:$0xff]  ;;  %v354_v13 = vld [vmem:[%s3405_s1 + $0x40] sm:$0xff]  ;;  %s1977_s26 = sshll.u32 %s3416_s10, 3 }
  0x20   : > { %2276 = vmatpush3.msra.mxu0 %v360_v2  ;;  %2311 = vmatpush3.msra.mxu1 %v472_v7  ;;  %v468_v14 = vld [vmem:[#allocation3 + $0xd0] sm:$0xff]  ;;  %v353_v15 = vld [vmem:[%s3405_s1 + $0x38] sm:$0xff]  ;;  %v467_v16 = vld [vmem:[#allocation3 + $0xc8] sm:$0xff]  ;;  %s338_s14 = scalar_lea.vmem %s3404_s0, %s1977_s26  ;;  %s342_s13 = scalar_lea.vmem %s3413_s9, %s1977_s26 }
  0x21   : > { %2277 = vmatprep.subr.mxu0 %v2904_v0  ;;  %2312 = vmatprep.subr.mxu1 %v2904_v0  ;;  %v352_v17 = vld [vmem:[%s3405_s1 + $0x30] sm:$0xff]  ;;  %v466_v18 = vld [vmem:[#allocation3 + $0xc0] sm:$0xff]  ;;  %v351_v19 = vld [vmem:[%s3405_s1 + $0x28] sm:$0xff] }
  0x22   : > { %2278 = vmatpush3.msra.mxu0 %v359_v3  ;;  %2313 = vmatpush3.msra.mxu1 %v471_v8  ;;  %v465_v20 = vld [vmem:[#allocation3 + $0xb8] sm:$0xff]  ;;  %v350_v21 = vld [vmem:[%s3405_s1 + $0x20] sm:$0xff]  ;;  %v464_v22 = vld [vmem:[#allocation3 + $0xb0] sm:$0xff] }
  0x23   : > { %2279 = vmatprep.subr.mxu0 %v2904_v0  ;;  %2314 = vmatprep.subr.mxu1 %v2904_v0  ;;  %v349_v23 = vld [vmem:[%s3405_s1 + $0x18] sm:$0xff]  ;;  %v463_v24 = vld [vmem:[#allocation3 + $0xa8] sm:$0xff]  ;;  %v348_v25 = vld [vmem:[%s3405_s1 + $0x10] sm:$0xff] }
  0x24   : > { %2280 = vmatpush3.msra.mxu0 %v358_v4  ;;  %2315 = vmatpush3.msra.mxu1 %v470_v10  ;;  %v462_v26 = vld [vmem:[#allocation3 + $0xa0] sm:$0xff]  ;;  %v347_v27 = vld [vmem:[%s3405_s1 + $0x8] sm:$0xff]  ;;  %v461_v28 = vld [vmem:[#allocation3 + $0x98] sm:$0xff] }
  0x25   : > { %2281 = vmatprep.subr.mxu0 %v2904_v0  ;;  %2316 = vmatprep.subr.mxu1 %v2904_v0  ;;  %v346_v29 = vld [vmem:[%s3405_s1] sm:$0xff]  ;;  %v456_v31 = vld [vmem:[#allocation3 + $0x78] sm:$0xff]  ;;  %v460_v32 = vld [vmem:[#allocation3 + $0x90] sm:$0xff] }
  0x26   : > { %2282 = vmatpush3.msra.mxu0 %v357_v6  ;;  %2317 = vmatpush3.msra.mxu1 %v469_v12  ;;  %v345_v30 = vld [vmem:[%s338_s14] sm:$0xff]  ;;  %v455_v33 = vld [vmem:[#allocation3 + $0x70] sm:$0xff]  ;;  %v453_v36 = vld [vmem:[#allocation3 + $0x60] sm:$0xff] }
  0x27   : > { %2283 = vmatprep.subr.mxu0 %v2904_v0  ;;  %2318 = vmatprep.subr.mxu1 %v2904_v0  ;;  %v459_v34 = vld [vmem:[#allocation3 + $0x88] sm:$0xff]  ;;  %v452_v37 = vld [vmem:[#allocation3 + $0x58] sm:$0xff]  ;;  %v451_v38 = vld [vmem:[#allocation3 + $0x50] sm:$0xff] }
  0x28   : > { %2284 = vmatpush3.msra.mxu0 %v356_v9  ;;  %2319 = vmatpush3.msra.mxu1 %v468_v14  ;;  %v454_v35 = vld [vmem:[#allocation3 + $0x68] sm:$0xff]  ;;  %v449_v40 = vld [vmem:[#allocation3 + $0x40] sm:$0xff]  ;;  %v448_v41 = vld [vmem:[#allocation3 + $0x38] sm:$0xff] }
  0x29   : > { %2285 = vmatprep.subr.mxu0 %v2904_v0  ;;  %2320 = vmatprep.subr.mxu1 %v2904_v0  ;;  %v450_v39 = vld [vmem:[#allocation3 + $0x48] sm:$0xff]  ;;  %v447_v42 = vld [vmem:[#allocation3 + $0x30] sm:$0xff]  ;;  %v458_v44 = vld [vmem:[#allocation3 + $0x80] sm:$0xff] }
  0x2a   : > { %2286 = vmatpush3.msra.mxu0 %v355_v11  ;;  %2321 = vmatpush3.msra.mxu1 %v467_v16  ;;  %v446_v43 = vld [vmem:[#allocation3 + $0x28] sm:$0xff]  ;;  %v445_v45 = vld [vmem:[#allocation3 + $0x20] sm:$0xff]  ;;  %v444_v46 = vld [vmem:[#allocation3 + $0x18] sm:$0xff] }
  0x2b   : > { %2287 = vmatprep.subr.mxu0 %v2904_v0  ;;  %2322 = vmatprep.subr.mxu1 %v2904_v0  ;;  %v443_v47 = vld [vmem:[#allocation3 + $0x10] sm:$0xff]  ;;  %v442_v48 = vld [vmem:[#allocation3 + $0x8] sm:$0xff]  ;;  %v441_v49 = vld [vmem:[#allocation3] sm:$0xff] }
  0x2c   : > { %2288 = vmatpush3.msra.mxu0 %v354_v13  ;;  %2323 = vmatpush3.msra.mxu1 %v466_v18  ;;  %v1979_v50 = vld [vmem:[%s3406_s2] ss:$0 sm:$0xff]  ;;  %v631_v53 = vld [vmem:[#allocation3 + $0x178] sm:$0xff]  ;;  %v630_v55 = vld [vmem:[#allocation3 + $0x170] sm:$0xff] }
  0x2d   : > { %2289 = vmatprep.subr.mxu0 %v2904_v0  ;;  %2324 = vmatprep.subr.mxu1 %v2904_v0  ;;  %v629_v56 = vld [vmem:[#allocation3 + $0x168] sm:$0xff]  ;;  %v628_v57 = vld [vmem:[#allocation3 + $0x160] sm:$0xff]  ;;  %v627_v58 = vld [vmem:[#allocation3 + $0x158] sm:$0xff] }
  0x2e   : > { %2290 = vmatpush3.msra.mxu0 %v353_v15  ;;  %2325 = vmatpush3.msra.mxu1 %v465_v20  ;;  %v626_v60 = vld [vmem:[#allocation3 + $0x150] sm:$0xff]  ;;  %v625_v61 = vld [vmem:[#allocation3 + $0x148] sm:$0xff]  ;;  %v624_v62 = vld [vmem:[#allocation3 + $0x140] sm:$0xff] }
  0x2f   : > { %2291 = vmatprep.subr.mxu0 %v2904_v0  ;;  %2326 = vmatprep.subr.mxu1 %v2904_v0  ;;  %v623_v63 = vld [vmem:[#allocation3 + $0x138] sm:$0xff]  ;;  %v622_v1 = vld [vmem:[#allocation3 + $0x130] sm:$0xff]  ;;  %v621_v2 = vld [vmem:[#allocation3 + $0x128] sm:$0xff] }
  0x30   : > { %2292 = vmatpush3.msra.mxu0 %v352_v17  ;;  %2327 = vmatpush3.msra.mxu1 %v464_v22  ;;  %v620_v3 = vld [vmem:[#allocation3 + $0x120] sm:$0xff]  ;;  %v619_v4 = vld [vmem:[#allocation3 + $0x118] sm:$0xff]  ;;  %v618_v5 = vld [vmem:[#allocation3 + $0x110] sm:$0xff] }
  0x31   : > { %2293 = vmatprep.subr.mxu0 %v2904_v0  ;;  %2328 = vmatprep.subr.mxu1 %v2904_v0  ;;  %v617_v6 = vld [vmem:[#allocation3 + $0x108] sm:$0xff]  ;;  %v616_v7 = vld [vmem:[#allocation3 + $0x100] sm:$0xff]  ;;  %v756_v9 = vld [vmem:[#allocation3 + $0x278] sm:$0xff] }
  0x32   : > { %2294 = vmatpush3.msra.mxu0 %v351_v19  ;;  %2329 = vmatpush3.msra.mxu1 %v463_v24  ;;  %v755_v10 = vld [vmem:[#allocation3 + $0x270] sm:$0xff]  ;;  %v739_v11 = vld [vmem:[#allocation3 + $0x1f8] sm:$0xff]  ;;  %v754_v12 = vld [vmem:[#allocation3 + $0x268] sm:$0xff] }
  0x33   : > { %2295 = vmatprep.subr.mxu0 %v2904_v0  ;;  %2330 = vmatprep.subr.mxu1 %v2904_v0  ;;  %v738_v13 = vld [vmem:[#allocation3 + $0x1f0] sm:$0xff]  ;;  %v737_v14 = vld [vmem:[#allocation3 + $0x1e8] sm:$0xff]  ;;  %v753_v15 = vld [vmem:[#allocation3 + $0x260] sm:$0xff] }
  0x34   : > { %2296 = vmatpush3.msra.mxu0 %v350_v21  ;;  %2331 = vmatpush3.msra.mxu1 %v462_v26  ;;  %v736_v16 = vld [vmem:[#allocation3 + $0x1e0] sm:$0xff]  ;;  %v752_v17 = vld [vmem:[#allocation3 + $0x258] sm:$0xff]  ;;  %v751_v19 = vld [vmem:[#allocation3 + $0x250] sm:$0xff] }
  0x35   : > { %2297 = vmatprep.subr.mxu0 %v2904_v0  ;;  %2332 = vmatprep.subr.mxu1 %v2904_v0  ;;  %v735_v18 = vld [vmem:[#allocation3 + $0x1d8] sm:$0xff]  ;;  %v734_v20 = vld [vmem:[#allocation3 + $0x1d0] sm:$0xff]  ;;  %v750_v21 = vld [vmem:[#allocation3 + $0x248] sm:$0xff] }
  0x36   : > { %2298 = vmatpush3.msra.mxu0 %v349_v23  ;;  %2333 = vmatpush3.msra.mxu1 %v461_v28  ;;  %v749_v22 = vld [vmem:[#allocation3 + $0x240] sm:$0xff]  ;;  %v748_v23 = vld [vmem:[#allocation3 + $0x238] sm:$0xff]  ;;  %v747_v24 = vld [vmem:[#allocation3 + $0x230] sm:$0xff] }
  0x37   : > { %2299 = vmatprep.subr.mxu0 %v2904_v0  ;;  %2334 = vmatprep.subr.mxu1 %v2904_v0  ;;  %v733_v26 = vld [vmem:[#allocation3 + $0x1c8] sm:$0xff]  ;;  %v732_v28 = vld [vmem:[#allocation3 + $0x1c0] sm:$0xff] }
  0x38   : > { %2300 = vmatpush3.msra.mxu0 %v348_v25  ;;  %2335 = vmatpush3.msra.mxu1 %v460_v32  ;;  %v746_v25 = vld [vmem:[#allocation3 + $0x228] sm:$0xff]  ;;  %v730_v32 = vld [vmem:[#allocation3 + $0x1b0] sm:$0xff] }
  0x39   : > { %2301 = vmatprep.subr.mxu0 %v2904_v0  ;;  %2336 = vmatprep.subr.mxu1 %v2904_v0 }
  0x3a   : > { %2302 = vmatpush3.msra.mxu0 %v347_v27  ;;  %2337 = vmatpush3.msra.mxu1 %v459_v34  ;;  %v745_v27 = vld [vmem:[#allocation3 + $0x220] sm:$0xff]  ;;  %v729_v34 = vld [vmem:[#allocation3 + $0x1a8] sm:$0xff] }
  0x3b   : > { %2303 = vmatprep.subr.mxu0 %v2904_v0  ;;  %2338 = vmatprep.subr.mxu1 %v2904_v0 }
  0x3c   : > { %2304 = vmatpush3.msra.mxu0 %v346_v29  ;;  %2339 = vmatpush3.msra.mxu1 %v458_v44  ;;  %v744_v29 = vld [vmem:[#allocation3 + $0x218] sm:$0xff] }
  0x3d   : > { %2306 = vmatmul.mubr.f32.vlgmr.msra.gmra.mxu0 %v345_v30  ;;  %2343 = vmatprep.subr.mxu0 %v2904_v0  ;;  %v731_v30 = vld [vmem:[#allocation3 + $0x1b8] sm:$0xff] }
  0x3e   : > { %2344 = vmatpush3.msra.mxu0 %v456_v31  ;;  %2375 = vmatprep.mubr.msk.f32.mxu0 %vm2905_vm0, %v2904_v0  ;;  %v743_v31 = vld [vmem:[#allocation3 + $0x210] sm:$0xff] }
  0x3f   : > { %2345 = vmatprep.subr.mxu0 %v2904_v0  ;;  %2378 = vmatprep.subr.mxu1 %v2904_v0 }
  0x40   : > { %2346 = vmatpush3.msra.mxu0 %v455_v33  ;;  %v742_v33 = vld [vmem:[#allocation3 + $0x208] sm:$0xff] }
  0x41   : > { %2347 = vmatprep.subr.mxu0 %v2904_v0 }
  0x42   : > { %2348 = vmatpush3.msra.mxu0 %v454_v35  ;;  %v741_v35 = vld [vmem:[#allocation3 + $0x200] sm:$0xff] }
  0x43   : > { %2349 = vmatprep.subr.mxu0 %v2904_v0 }
  0x44   : > { %2350 = vmatpush3.msra.mxu0 %v453_v36  ;;  %v728_v36 = vld [vmem:[#allocation3 + $0x1a0] sm:$0xff] }
  0x45   : > { %2351 = vmatprep.subr.mxu0 %v2904_v0 }
  0x46   : > { %2352 = vmatpush3.msra.mxu0 %v452_v37  ;;  %v727_v37 = vld [vmem:[#allocation3 + $0x198] sm:$0xff] }
  0x47   : > { %2353 = vmatprep.subr.mxu0 %v2904_v0 }
  0x48   : > { %2354 = vmatpush3.msra.mxu0 %v451_v38  ;;  %v726_v38 = vld [vmem:[#allocation3 + $0x190] sm:$0xff] }
  0x49   : > { %2355 = vmatprep.subr.mxu0 %v2904_v0 }
  0x4a   : > { %2356 = vmatpush3.msra.mxu0 %v450_v39  ;;  %v725_v39 = vld [vmem:[#allocation3 + $0x188] sm:$0xff] }
  0x4b   : > { %2357 = vmatprep.subr.mxu0 %v2904_v0 }
  0x4c   : > { %2358 = vmatpush3.msra.mxu0 %v449_v40  ;;  %v724_v40 = vld [vmem:[#allocation3 + $0x180] sm:$0xff] }
  0x4d   : > { %2359 = vmatprep.subr.mxu0 %v2904_v0 }
  0x4e   : > { %2360 = vmatpush3.msra.mxu0 %v448_v41 }
  0x4f   : > { %2361 = vmatprep.subr.mxu0 %v2904_v0 }
  0x50   : > { %2362 = vmatpush3.msra.mxu0 %v447_v42 }
  0x51   : > { %2363 = vmatprep.subr.mxu0 %v2904_v0 }
  0x52   : > { %2364 = vmatpush3.msra.mxu0 %v446_v43 }
  0x53   : > { %2365 = vmatprep.subr.mxu0 %v2904_v0 }
  0x54   : > { %2366 = vmatpush3.msra.mxu0 %v445_v45 }
  0x55   : > { %2367 = vmatprep.subr.mxu0 %v2904_v0 }
  0x56   : > { %2368 = vmatpush3.msra.mxu0 %v444_v46 }
  0x57   : > { %2369 = vmatprep.subr.mxu0 %v2904_v0 }
  0x58   : > { %2370 = vmatpush3.msra.mxu0 %v443_v47  ;;  %v1980_v47 = vld [vmem:[%s3408_s4] ss:$0 sm:$0xff] }
  0x59   : > { %2371 = vmatprep.subr.mxu0 %v2904_v0 }
  0x5a   : > { %2372 = vmatpush3.msra.mxu0 %v442_v48 }
  0x5b   : > { %2373 = vmatprep.subr.mxu0 %v2904_v0 }
  0x5c   : > { %2374 = vmatpush3.msra.mxu0 %v441_v49  ;;  %v1981_v49 = vld [vmem:[%s3409_s5] ss:$0 sm:$0xff] }
  0x5d   : > { %2413 = vmatprep.subr.mxu0 %v2904_v0 }
  0xfd   : > { %v435_v51 = vpop.f32.mrf.mxu0 }
  0xfe   : > { %v3103_v52 = vadd.f32 %v1979_v50, %v435_v51 }
  0xff   : > { %v2307_v54 = vpop.f32.mrf.mxu0 }
 0x100   : > { %439 = vst [vmem:[#allocation2 + $0x8] sm:$0xff] %v3103_v52  ;;  %2341 = vmatmul.mubr.f32.vlgmr.msra.gmra.mxu1 %v3103_v52 }
 0x101   : > { %2379 = vmatpush3.msra.mxu1 %v631_v53  ;;  %2410 = vmatprep.mubr.msk.f32.mxu1 %vm2905_vm0, %v2904_v0 }
 0x102   : > { %2380 = vmatprep.subr.mxu1 %v2904_v0 }
 0x103   : > { %2381 = vmatpush3.msra.mxu1 %v630_v55 }
 0x104   : > { %2382 = vmatprep.subr.mxu1 %v2904_v0 }
 0x105   : > { %2383 = vmatpush3.msra.mxu1 %v629_v56  ;;  %v914_v56 = vld [vmem:[#allocation3 + $0x2f8] sm:$0xff] }
 0x106   : > { %2384 = vmatprep.subr.mxu1 %v2904_v0 }
 0x107   : > { %2385 = vmatpush3.msra.mxu1 %v628_v57  ;;  %v440_v59 = vld [vmem:[#allocation2 + $0x7] sm:$0xff] }
 0x108   : > { %2386 = vmatprep.subr.mxu1 %v2904_v0  ;;  %2376 = vmatmul.mubr.f32.vlgmr.msra.gmra.mxu0 %v440_v59  ;;  %v614_v8 = vld [vmem:[#allocation2 + $0x9] sm:$0xff]  ;;  %v911_v59 = vld [vmem:[#allocation3 + $0x2e0] sm:$0xff] }
 0x109   : > { %2387 = vmatpush3.msra.mxu1 %v627_v58  ;;  %2445 = vmatprep.mubr.msk.f32.mxu0 %vm2905_vm0, %v2904_v0  ;;  %v913_v57 = vld [vmem:[#allocation3 + $0x2f0] sm:$0xff]  ;;  %v912_v58 = vld [vmem:[#allocation3 + $0x2e8] sm:$0xff] }
 0x10a   : > { %2388 = vmatprep.subr.mxu1 %v2904_v0  ;;  %2414 = vmatpush3.msra.mxu0 %v756_v9  ;;  %v899_v9 = vld [vmem:[#allocation3 + $0x280] sm:$0xff] }
 0x10b   : > { %2389 = vmatpush3.msra.mxu1 %v626_v60  ;;  %2415 = vmatprep.subr.mxu0 %v2904_v0  ;;  %v910_v60 = vld [vmem:[#allocation3 + $0x2d8] sm:$0xff] }
 0x10c   : > { %2390 = vmatprep.subr.mxu1 %v2904_v0  ;;  %2416 = vmatpush3.msra.mxu0 %v755_v10 }
 0x10d   : > { %2391 = vmatpush3.msra.mxu1 %v625_v61  ;;  %2417 = vmatprep.subr.mxu0 %v2904_v0 }
 0x10e   : > { %2392 = vmatprep.subr.mxu1 %v2904_v0  ;;  %2418 = vmatpush3.msra.mxu0 %v754_v12  ;;  %v1041_v12 = vld [vmem:[#allocation3 + $0x3f0] sm:$0xff] }
 0x10f   : > { %2393 = vmatpush3.msra.mxu1 %v624_v62  ;;  %2419 = vmatprep.subr.mxu0 %v2904_v0  ;;  %v909_v62 = vld [vmem:[#allocation3 + $0x2d0] sm:$0xff] }
 0x110   : > { %2394 = vmatprep.subr.mxu1 %v2904_v0  ;;  %2420 = vmatpush3.msra.mxu0 %v753_v15  ;;  %v1024_v15 = vld [vmem:[#allocation3 + $0x370] sm:$0xff] }
 0x111   : > { %2395 = vmatpush3.msra.mxu1 %v623_v63  ;;  %2421 = vmatprep.subr.mxu0 %v2904_v0  ;;  %v908_v63 = vld [vmem:[#allocation3 + $0x2c8] sm:$0xff] }
 0x112   : > { %2396 = vmatprep.subr.mxu1 %v2904_v0  ;;  %2422 = vmatpush3.msra.mxu0 %v752_v17  ;;  %v1039_v17 = vld [vmem:[#allocation3 + $0x3e0] sm:$0xff] }
 0x113   : > { %2397 = vmatpush3.msra.mxu1 %v622_v1  ;;  %2423 = vmatprep.subr.mxu0 %v2904_v0  ;;  %v907_v1 = vld [vmem:[#allocation3 + $0x2c0] sm:$0xff] }
 0x114   : > { %2398 = vmatprep.subr.mxu1 %v2904_v0  ;;  %2424 = vmatpush3.msra.mxu0 %v751_v19  ;;  %v1038_v19 = vld [vmem:[#allocation3 + $0x3d8] sm:$0xff] }
 0x115   : > { %2399 = vmatpush3.msra.mxu1 %v621_v2  ;;  %2425 = vmatprep.subr.mxu0 %v2904_v0  ;;  %v906_v2 = vld [vmem:[#allocation3 + $0x2b8] sm:$0xff] }
 0x116   : > { %2400 = vmatprep.subr.mxu1 %v2904_v0  ;;  %2426 = vmatpush3.msra.mxu0 %v750_v21  ;;  %v1037_v21 = vld [vmem:[#allocation3 + $0x3d0] sm:$0xff] }
 0x117   : > { %2401 = vmatpush3.msra.mxu1 %v620_v3  ;;  %2427 = vmatprep.subr.mxu0 %v2904_v0  ;;  %v905_v3 = vld [vmem:[#allocation3 + $0x2b0] sm:$0xff] }
 0x118   : > { %2402 = vmatprep.subr.mxu1 %v2904_v0  ;;  %2428 = vmatpush3.msra.mxu0 %v749_v22  ;;  %v1036_v22 = vld [vmem:[#allocation3 + $0x3c8] sm:$0xff] }
 0x119   : > { %2403 = vmatpush3.msra.mxu1 %v619_v4  ;;  %2429 = vmatprep.subr.mxu0 %v2904_v0  ;;  %v904_v4 = vld [vmem:[#allocation3 + $0x2a8] sm:$0xff] }
 0x11a   : > { %2404 = vmatprep.subr.mxu1 %v2904_v0  ;;  %2430 = vmatpush3.msra.mxu0 %v748_v23  ;;  %v1035_v23 = vld [vmem:[#allocation3 + $0x3c0] sm:$0xff] }
 0x11b   : > { %2405 = vmatpush3.msra.mxu1 %v618_v5  ;;  %2431 = vmatprep.subr.mxu0 %v2904_v0  ;;  %v903_v5 = vld [vmem:[#allocation3 + $0x2a0] sm:$0xff] }
 0x11c   : > { %2406 = vmatprep.subr.mxu1 %v2904_v0  ;;  %2432 = vmatpush3.msra.mxu0 %v747_v24  ;;  %v1034_v24 = vld [vmem:[#allocation3 + $0x3b8] sm:$0xff] }
 0x11d   : > { %2407 = vmatpush3.msra.mxu1 %v617_v6  ;;  %2433 = vmatprep.subr.mxu0 %v2904_v0  ;;  %v902_v6 = vld [vmem:[#allocation3 + $0x298] sm:$0xff] }
 0x11e   : > { %2408 = vmatprep.subr.mxu1 %v2904_v0  ;;  %2434 = vmatpush3.msra.mxu0 %v746_v25  ;;  %v1033_v25 = vld [vmem:[#allocation3 + $0x3b0] sm:$0xff] }
 0x11f   : > { %2409 = vmatpush3.msra.mxu1 %v616_v7  ;;  %2435 = vmatprep.subr.mxu0 %v2904_v0  ;;  %v901_v7 = vld [vmem:[#allocation3 + $0x290] sm:$0xff] }
 0x120   : > { %2411 = vmatmul.mubr.f32.vlgmr.msra.gmra.mxu1 %v614_v8  ;;  %2448 = vmatprep.subr.mxu1 %v2904_v0  ;;  %v900_v8 = vld [vmem:[#allocation3 + $0x288] sm:$0xff] }
 0x121   : > { %2480 = vmatprep.mubr.msk.f32.mxu1 %vm2905_vm0, %v2904_v0  ;;  %2449 = vmatpush3.msra.mxu1 %v739_v11  ;;  %v1042_v11 = vld [vmem:[#allocation3 + $0x3f8] sm:$0xff] }
 0x122   : > { %2450 = vmatprep.subr.mxu1 %v2904_v0  ;;  %2436 = vmatpush3.msra.mxu0 %v745_v27  ;;  %v1032_v27 = vld [vmem:[#allocation3 + $0x3a8] sm:$0xff] }
 0x123   : > { %2451 = vmatpush3.msra.mxu1 %v738_v13  ;;  %2437 = vmatprep.subr.mxu0 %v2904_v0  ;;  %v1025_v13 = vld [vmem:[#allocation3 + $0x378] sm:$0xff] }
 0x124   : > { %2452 = vmatprep.subr.mxu1 %v2904_v0  ;;  %2438 = vmatpush3.msra.mxu0 %v744_v29  ;;  %v1031_v29 = vld [vmem:[#allocation3 + $0x3a0] sm:$0xff] }
 0x125   : > { %2453 = vmatpush3.msra.mxu1 %v737_v14  ;;  %2439 = vmatprep.subr.mxu0 %v2904_v0  ;;  %v1040_v14 = vld [vmem:[#allocation3 + $0x3e8] sm:$0xff] }
 0x126   : > { %2454 = vmatprep.subr.mxu1 %v2904_v0  ;;  %2440 = vmatpush3.msra.mxu0 %v743_v31  ;;  %v1030_v31 = vld [vmem:[#allocation3 + $0x398] sm:$0xff] }
 0x127   : > { %2455 = vmatpush3.msra.mxu1 %v736_v16  ;;  %2441 = vmatprep.subr.mxu0 %v2904_v0  ;;  %v1023_v16 = vld [vmem:[#allocation3 + $0x368] sm:$0xff] }
 0x128   : > { %2456 = vmatprep.subr.mxu1 %v2904_v0  ;;  %2442 = vmatpush3.msra.mxu0 %v742_v33  ;;  %v1029_v33 = vld [vmem:[#allocation3 + $0x390] sm:$0xff] }
 0x129   : > { %2457 = vmatpush3.msra.mxu1 %v735_v18  ;;  %2443 = vmatprep.subr.mxu0 %v2904_v0  ;;  %v1022_v18 = vld [vmem:[#allocation3 + $0x360] sm:$0xff] }
 0x12a   : > { %2458 = vmatprep.subr.mxu1 %v2904_v0  ;;  %2444 = vmatpush3.msra.mxu0 %v741_v35  ;;  %v1028_v35 = vld [vmem:[#allocation3 + $0x388] sm:$0xff] }
 0x12b   : > { %2459 = vmatpush3.msra.mxu1 %v734_v20  ;;  %2483 = vmatprep.subr.mxu0 %v2904_v0  ;;  %v1021_v20 = vld [vmem:[#allocation3 + $0x358] sm:$0xff] }
 0x12c   : > { %2460 = vmatprep.subr.mxu1 %v2904_v0 }
 0x12d   : > { %2461 = vmatpush3.msra.mxu1 %v733_v26  ;;  %v1020_v26 = vld [vmem:[#allocation3 + $0x350] sm:$0xff] }
 0x12e   : > { %2462 = vmatprep.subr.mxu1 %v2904_v0 }
 0x12f   : > { %2463 = vmatpush3.msra.mxu1 %v732_v28  ;;  %v1019_v28 = vld [vmem:[#allocation3 + $0x348] sm:$0xff] }
 0x130   : > { %2464 = vmatprep.subr.mxu1 %v2904_v0 }
 0x131   : > { %2465 = vmatpush3.msra.mxu1 %v731_v30  ;;  %v1018_v30 = vld [vmem:[#allocation3 + $0x340] sm:$0xff] }
 0x132   : > { %2466 = vmatprep.subr.mxu1 %v2904_v0 }
 0x133   : > { %2467 = vmatpush3.msra.mxu1 %v730_v32  ;;  %v1017_v32 = vld [vmem:[#allocation3 + $0x338] sm:$0xff] }
 0x134   : > { %2468 = vmatprep.subr.mxu1 %v2904_v0 }
 0x135   : > { %2469 = vmatpush3.msra.mxu1 %v729_v34  ;;  %v1016_v34 = vld [vmem:[#allocation3 + $0x330] sm:$0xff] }
 0x136   : > { %2470 = vmatprep.subr.mxu1 %v2904_v0 }
 0x137   : > { %2471 = vmatpush3.msra.mxu1 %v728_v36  ;;  %v1015_v36 = vld [vmem:[#allocation3 + $0x328] sm:$0xff] }
 0x138   : > { %2472 = vmatprep.subr.mxu1 %v2904_v0 }
 0x139   : > { %2473 = vmatpush3.msra.mxu1 %v727_v37  ;;  %v1027_v37 = vld [vmem:[#allocation3 + $0x380] sm:$0xff] }
 0x13a   : > { %2474 = vmatprep.subr.mxu1 %v2904_v0 }
 0x13b   : > { %2475 = vmatpush3.msra.mxu1 %v726_v38  ;;  %v1014_v38 = vld [vmem:[#allocation3 + $0x320] sm:$0xff] }
 0x13c   : > { %2476 = vmatprep.subr.mxu1 %v2904_v0 }
 0x13d   : > { %2477 = vmatpush3.msra.mxu1 %v725_v39  ;;  %v1013_v39 = vld [vmem:[#allocation3 + $0x318] sm:$0xff] }
 0x13e   : > { %2478 = vmatprep.subr.mxu1 %v2904_v0 }
 0x13f   : > { %2479 = vmatpush3.msra.mxu1 %v724_v40  ;;  %v1012_v40 = vld [vmem:[#allocation3 + $0x310] sm:$0xff] }
 0x140   : > { %2518 = vmatprep.subr.mxu1 %v2904_v0 }
 0x1c0   : > { %v540_v41 = vpop.f32.mrf.mxu1 }
 0x1c2   : > { %v2342_v42 = vpop.f32.mrf.mxu1 }
 0x1c3   : > { %v1010_v42 = vld [vmem:[#allocation3 + $0x300] sm:$0xff] }
 0x1c8   : > { %v610_v43 = vpop.f32.mrf.mxu0 }
 0x1c9   : > { %v611_v45 = vadd.f32 %v610_v43, %v540_v41  ;;  %v1011_v41 = vld [vmem:[#allocation3 + $0x308] sm:$0xff] }
 0x1ca   : > { %v2377_v44 = vpop.f32.mrf.mxu0 }
 0x1e0   : > { %v698_v46 = vpop.f32.mrf.mxu1 }
 0x1e1   : > { %v702_v48 = vadd.f32 %v698_v46, %v611_v45 }
 0x1e2   : > { %v2412_v50 = vpop.f32.mrf.mxu1 }
 0x1e3   : > { %v710_v51 = vmul.f32 %v1980_v47, %v702_v48 }
 0x1e5   : > { %v718_v53 = vadd.f32 %v1981_v49, %v710_v51  ;;  %v1983_v49 = vld [vmem:[%s3408_s4 + $0x1] ss:$0 sm:$0xff] }
 0x1e6   : > { %v1985_v51 = vld [vmem:[%s3409_s5 + $0x1] ss:$0 sm:$0xff] }
 0x1e7   : > { %v719_v54 = vmul.f32 0.01, %v718_v53 }
 0x1e9   : > { %v3167_v55 = vmax.f32 %v718_v53, %v719_v54 }
 0x1eb   : > { %721 = vst [vmem:[#allocation2 + $0x8] sm:$0xff] %v3167_v55  ;;  %2446 = vmatmul.mubr.f32.vlgmr.msra.gmra.mxu0 %v3167_v55 }
 0x1ec   : > { %2484 = vmatpush3.msra.mxu0 %v914_v56  ;;  %2515 = vmatprep.mubr.msk.f32.mxu0 %vm2905_vm0, %v2904_v0 }
 0x1ed   : > { %2485 = vmatprep.subr.mxu0 %v2904_v0 }
 0x1ee   : > { %2486 = vmatpush3.msra.mxu0 %v913_v57 }
 0x1ef   : > { %2487 = vmatprep.subr.mxu0 %v2904_v0 }
 0x1f0   : > { %2488 = vmatpush3.msra.mxu0 %v912_v58 }
 0x1f1   : > { %2489 = vmatprep.subr.mxu0 %v2904_v0 }
 0x1f2   : > { %2490 = vmatpush3.msra.mxu0 %v911_v59  ;;  %v722_v61 = vld [vmem:[#allocation2 + $0x6] sm:$0xff] }
 0x1f3   : > { %2491 = vmatprep.subr.mxu0 %v2904_v0  ;;  %2481 = vmatmul.mubr.f32.vlgmr.msra.gmra.mxu1 %v722_v61  ;;  %v897_v10 = vld [vmem:[#allocation2 + $0xa] sm:$0xff] }
 0x1f4   : > { %2492 = vmatpush3.msra.mxu0 %v910_v60  ;;  %2550 = vmatprep.mubr.msk.f32.mxu1 %vm2905_vm0, %v2904_v0  ;;  %v1200_v60 = vld [vmem:[#allocation3 + $0x478] sm:$0xff]  ;;  %v1199_v61 = vld [vmem:[#allocation3 + $0x470] sm:$0xff] }
 0x1f5   : > { %2493 = vmatprep.subr.mxu0 %v2904_v0  ;;  %2519 = vmatpush3.msra.mxu1 %v1042_v11  ;;  %v1186_v11 = vld [vmem:[#allocation3 + $0x408] sm:$0xff] }
 0x1f6   : > { %2494 = vmatpush3.msra.mxu0 %v909_v62  ;;  %2520 = vmatprep.subr.mxu1 %v2904_v0  ;;  %v1198_v62 = vld [vmem:[#allocation3 + $0x468] sm:$0xff] }
 0x1f7   : > { %2495 = vmatprep.subr.mxu0 %v2904_v0  ;;  %2521 = vmatpush3.msra.mxu1 %v1041_v12  ;;  %v1185_v12 = vld [vmem:[#allocation3 + $0x400] sm:$0xff] }
 0x1f8   : > { %2496 = vmatpush3.msra.mxu0 %v908_v63  ;;  %2522 = vmatprep.subr.mxu1 %v2904_v0  ;;  %v1197_v63 = vld [vmem:[#allocation3 + $0x460] sm:$0xff] }
 0x1f9   : > { %2497 = vmatprep.subr.mxu0 %v2904_v0  ;;  %2523 = vmatpush3.msra.mxu1 %v1040_v14  ;;  %v1328_v14 = vld [vmem:[#allocation3 + $0x578] sm:$0xff] }
 0x1fa   : > { %2498 = vmatpush3.msra.mxu0 %v907_v1  ;;  %2524 = vmatprep.subr.mxu1 %v2904_v0 }
 0x1fb   : > { %2499 = vmatprep.subr.mxu0 %v2904_v0  ;;  %2525 = vmatpush3.msra.mxu1 %v1039_v17  ;;  %v1326_v17 = vld [vmem:[#allocation3 + $0x568] sm:$0xff] }
 0x1fc   : > { %2500 = vmatpush3.msra.mxu0 %v906_v2  ;;  %2526 = vmatprep.subr.mxu1 %v2904_v0  ;;  %v1195_v2 = vld [vmem:[#allocation3 + $0x450] sm:$0xff] }
 0x1fd   : > { %2501 = vmatprep.subr.mxu0 %v2904_v0  ;;  %2527 = vmatpush3.msra.mxu1 %v1038_v19  ;;  %v1309_v19 = vld [vmem:[#allocation3 + $0x4e8] sm:$0xff] }
 0x1fe   : > { %2502 = vmatpush3.msra.mxu0 %v905_v3  ;;  %2528 = vmatprep.subr.mxu1 %v2904_v0  ;;  %v3242_v3 = vld [vmem:[#allocation2] sm:$0xff] }
 0x1ff   : > { %2503 = vmatprep.subr.mxu0 %v2904_v0  ;;  %2529 = vmatpush3.msra.mxu1 %v1037_v21  ;;  %v1308_v21 = vld [vmem:[#allocation3 + $0x4e0] sm:$0xff] }
 0x200   : > { %2504 = vmatpush3.msra.mxu0 %v904_v4  ;;  %2530 = vmatprep.subr.mxu1 %v2904_v0  ;;  %v1194_v4 = vld [vmem:[#allocation3 + $0x448] sm:$0xff] }
 0x201   : > { %2505 = vmatprep.subr.mxu0 %v2904_v0  ;;  %2531 = vmatpush3.msra.mxu1 %v1036_v22  ;;  %v1324_v22 = vld [vmem:[#allocation3 + $0x558] sm:$0xff] }
 0x202   : > { %2506 = vmatpush3.msra.mxu0 %v903_v5  ;;  %2532 = vmatprep.subr.mxu1 %v2904_v0  ;;  %v1193_v5 = vld [vmem:[#allocation3 + $0x440] sm:$0xff] }
 0x203   : > { %2507 = vmatprep.subr.mxu0 %v2904_v0  ;;  %2533 = vmatpush3.msra.mxu1 %v1035_v23  ;;  %v1307_v23 = vld [vmem:[#allocation3 + $0x4d8] sm:$0xff] }
 0x204   : > { %2508 = vmatpush3.msra.mxu0 %v902_v6  ;;  %2534 = vmatprep.subr.mxu1 %v2904_v0  ;;  %v1192_v6 = vld [vmem:[#allocation3 + $0x438] sm:$0xff] }
 0x205   : > { %2509 = vmatprep.subr.mxu0 %v2904_v0  ;;  %2535 = vmatpush3.msra.mxu1 %v1034_v24  ;;  %v1323_v24 = vld [vmem:[#allocation3 + $0x550] sm:$0xff] }
 0x206   : > { %2510 = vmatpush3.msra.mxu0 %v901_v7  ;;  %2536 = vmatprep.subr.mxu1 %v2904_v0  ;;  %v1190_v7 = vld [vmem:[#allocation3 + $0x428] sm:$0xff] }
 0x207   : > { %2511 = vmatprep.subr.mxu0 %v2904_v0  ;;  %2537 = vmatpush3.msra.mxu1 %v1033_v25  ;;  %v1322_v25 = vld [vmem:[#allocation3 + $0x548] sm:$0xff] }
 0x208   : > { %2512 = vmatpush3.msra.mxu0 %v900_v8  ;;  %2538 = vmatprep.subr.mxu1 %v2904_v0  ;;  %v1189_v8 = vld [vmem:[#allocation3 + $0x420] sm:$0xff] }
 0x209   : > { %2513 = vmatprep.subr.mxu0 %v2904_v0  ;;  %2539 = vmatpush3.msra.mxu1 %v1032_v27  ;;  %v1320_v27 = vld [vmem:[#allocation3 + $0x538] sm:$0xff] }
 0x20a   : > { %2514 = vmatpush3.msra.mxu0 %v899_v9  ;;  %2540 = vmatprep.subr.mxu1 %v2904_v0  ;;  %v1188_v9 = vld [vmem:[#allocation3 + $0x418] sm:$0xff] }
 0x20b   : > { %2516 = vmatmul.mubr.f32.vlgmr.msra.gmra.mxu0 %v897_v10  ;;  %2553 = vmatprep.subr.mxu0 %v2904_v0  ;;  %v1187_v10 = vld [vmem:[#allocation3 + $0x410] sm:$0xff] }
 0x20c   : > { %2585 = vmatprep.mubr.msk.f32.mxu0 %vm2905_vm0, %v2904_v0  ;;  %2554 = vmatpush3.msra.mxu0 %v1025_v13 }
 0x20d   : > { %2555 = vmatprep.subr.mxu0 %v2904_v0  ;;  %2541 = vmatpush3.msra.mxu1 %v1031_v29  ;;  %v1306_v29 = vld [vmem:[#allocation3 + $0x4d0] sm:$0xff] }
 0x20e   : > { %2556 = vmatpush3.msra.mxu0 %v1024_v15  ;;  %2542 = vmatprep.subr.mxu1 %v2904_v0  ;;  %v1327_v15 = vld [vmem:[#allocation3 + $0x570] sm:$0xff] }
 0x20f   : > { %2557 = vmatprep.subr.mxu0 %v2904_v0  ;;  %2543 = vmatpush3.msra.mxu1 %v1030_v31  ;;  %v1305_v31 = vld [vmem:[#allocation3 + $0x4c8] sm:$0xff] }
 0x210   : > { %2558 = vmatpush3.msra.mxu0 %v1023_v16  ;;  %2544 = vmatprep.subr.mxu1 %v2904_v0  ;;  %v1311_v16 = vld [vmem:[#allocation3 + $0x4f8] sm:$0xff] }
 0x211   : > { %2559 = vmatprep.subr.mxu0 %v2904_v0  ;;  %2545 = vmatpush3.msra.mxu1 %v1029_v33  ;;  %v1304_v33 = vld [vmem:[#allocation3 + $0x4c0] sm:$0xff] }
 0x212   : > { %2560 = vmatpush3.msra.mxu0 %v1022_v18  ;;  %2546 = vmatprep.subr.mxu1 %v2904_v0  ;;  %v1310_v18 = vld [vmem:[#allocation3 + $0x4f0] sm:$0xff] }
 0x213   : > { %2561 = vmatprep.subr.mxu0 %v2904_v0  ;;  %2547 = vmatpush3.msra.mxu1 %v1028_v35  ;;  %v1303_v35 = vld [vmem:[#allocation3 + $0x4b8] sm:$0xff] }
 0x214   : > { %2562 = vmatpush3.msra.mxu0 %v1021_v20  ;;  %2548 = vmatprep.subr.mxu1 %v2904_v0  ;;  %v1325_v20 = vld [vmem:[#allocation3 + $0x560] sm:$0xff] }
 0x215   : > { %2563 = vmatprep.subr.mxu0 %v2904_v0  ;;  %2549 = vmatpush3.msra.mxu1 %v1027_v37  ;;  %v1302_v37 = vld [vmem:[#allocation3 + $0x4b0] sm:$0xff] }
 0x216   : > { %2564 = vmatpush3.msra.mxu0 %v1020_v26  ;;  %2588 = vmatprep.subr.mxu1 %v2904_v0  ;;  %v1321_v26 = vld [vmem:[#allocation3 + $0x540] sm:$0xff] }
 0x217   : > { %2565 = vmatprep.subr.mxu0 %v2904_v0 }
 0x218   : > { %2566 = vmatpush3.msra.mxu0 %v1019_v28  ;;  %v1319_v28 = vld [vmem:[#allocation3 + $0x530] sm:$0xff] }
 0x219   : > { %2567 = vmatprep.subr.mxu0 %v2904_v0 }
 0x21a   : > { %2568 = vmatpush3.msra.mxu0 %v1018_v30  ;;  %v1318_v30 = vld [vmem:[#allocation3 + $0x528] sm:$0xff] }
 0x21b   : > { %2569 = vmatprep.subr.mxu0 %v2904_v0 }
 0x21c   : > { %2570 = vmatpush3.msra.mxu0 %v1017_v32  ;;  %v1317_v32 = vld [vmem:[#allocation3 + $0x520] sm:$0xff] }
 0x21d   : > { %2571 = vmatprep.subr.mxu0 %v2904_v0 }
 0x21e   : > { %2572 = vmatpush3.msra.mxu0 %v1016_v34  ;;  %v1316_v34 = vld [vmem:[#allocation3 + $0x518] sm:$0xff] }
 0x21f   : > { %2573 = vmatprep.subr.mxu0 %v2904_v0 }
 0x220   : > { %2574 = vmatpush3.msra.mxu0 %v1015_v36  ;;  %v1315_v36 = vld [vmem:[#allocation3 + $0x510] sm:$0xff] }
 0x221   : > { %2575 = vmatprep.subr.mxu0 %v2904_v0 }
 0x222   : > { %2576 = vmatpush3.msra.mxu0 %v1014_v38  ;;  %v1314_v38 = vld [vmem:[#allocation3 + $0x508] sm:$0xff] }
 0x223   : > { %2577 = vmatprep.subr.mxu0 %v2904_v0 }
 0x224   : > { %2578 = vmatpush3.msra.mxu0 %v1013_v39  ;;  %v1301_v39 = vld [vmem:[#allocation3 + $0x4a8] sm:$0xff] }
 0x225   : > { %2579 = vmatprep.subr.mxu0 %v2904_v0 }
 0x226   : > { %2580 = vmatpush3.msra.mxu0 %v1012_v40  ;;  %v1313_v40 = vld [vmem:[#allocation3 + $0x500] sm:$0xff] }
 0x227   : > { %2581 = vmatprep.subr.mxu0 %v2904_v0 }
 0x228   : > { %2582 = vmatpush3.msra.mxu0 %v1011_v41  ;;  %v1300_v41 = vld [vmem:[#allocation3 + $0x4a0] sm:$0xff] }
 0x229   : > { %2583 = vmatprep.subr.mxu0 %v2904_v0 }
 0x22a   : > { %2584 = vmatpush3.msra.mxu0 %v1010_v42  ;;  %v1299_v42 = vld [vmem:[#allocation3 + $0x498] sm:$0xff] }
 0x22b   : > { %2623 = vmatprep.subr.mxu0 %v2904_v0 }
 0x2ab   : > { %v823_v43 = vpop.f32.mrf.mxu0 }
 0x2ad   : > { %v2447_v44 = vpop.f32.mrf.mxu0 }
 0x2ae   : > { %v1297_v44 = vld [vmem:[#allocation3 + $0x488] sm:$0xff] }
 0x2b3   : > { %v893_v45 = vpop.f32.mrf.mxu1 }
 0x2b4   : > { %v894_v47 = vadd.f32 %v893_v45, %v823_v43  ;;  %v1298_v43 = vld [vmem:[#allocation3 + $0x490] sm:$0xff]  ;;  %v1296_v45 = vld [vmem:[#allocation3 + $0x480] sm:$0xff] }
 0x2b5   : > { %v2482_v46 = vpop.f32.mrf.mxu1 }
 0x2cb   : > { %v981_v48 = vpop.f32.mrf.mxu0 }
 0x2cc   : > { %v985_v50 = vadd.f32 %v981_v48, %v894_v47 }
 0x2cd   : > { %v2517_v53 = vpop.f32.mrf.mxu0 }
 0x2ce   : > { %v994_v54 = vmul.f32 %v1983_v49, %v985_v50  ;;  %v1987_v53 = vld [vmem:[%s3408_s4 + $0x2] ss:$0 sm:$0xff] }
 0x2d0   : > { %v1003_v56 = vadd.f32 %v1985_v51, %v994_v54 }
 0x2d2   : > { %v1004_v57 = vmul.f32 0.01, %v1003_v56 }
 0x2d4   : > { %v1005_v58 = vmax.f32 %v1003_v56, %v1004_v57  ;;  %v1989_v56 = vld [vmem:[%s3409_s5 + $0x2] ss:$0 sm:$0xff] }
 0x2d6   : > { %v3232_v59 = vadd.f32 %v1005_v58, %v3103_v52  ;;  %v1196_v52 = vld [vmem:[#allocation3 + $0x458] sm:$0xff] }
 0x2d8   : > { %1007 = vst [vmem:[#allocation2 + $0x8] sm:$0xff] %v3232_v59  ;;  %2551 = vmatmul.mubr.f32.vlgmr.msra.gmra.mxu1 %v3232_v59 }
 0x2d9   : > { %2589 = vmatpush3.msra.mxu1 %v1200_v60  ;;  %2620 = vmatprep.mubr.msk.f32.mxu1 %vm2905_vm0, %v2904_v0 }
 0x2da   : > { %2590 = vmatprep.subr.mxu1 %v2904_v0 }
 0x2db   : > { %2591 = vmatpush3.msra.mxu1 %v1199_v61 }
 0x2dc   : > { %2592 = vmatprep.subr.mxu1 %v2904_v0 }
 0x2dd   : > { %2593 = vmatpush3.msra.mxu1 %v1198_v62 }
 0x2de   : > { %2594 = vmatprep.subr.mxu1 %v2904_v0 }
 0x2df   : > { %2595 = vmatpush3.msra.mxu1 %v1197_v63  ;;  %v1008_v1 = vld [vmem:[#allocation2 + $0x7] sm:$0xff] }
 0x2e0   : > { %2596 = vmatprep.subr.mxu1 %v2904_v0  ;;  %2586 = vmatmul.mubr.f32.vlgmr.msra.gmra.mxu0 %v1008_v1  ;;  %v1191_v0 = vld [vmem:[#allocation3 + $0x430] sm:$0xff] }
 0x2e1   : > { %2597 = vmatpush3.msra.mxu1 %v1196_v52  ;;  %2655 = vmatprep.mubr.msk.f32.mxu0 %vm2905_vm0, %v3242_v3  ;;  %v1183_v13 = vld [vmem:[#allocation2 + $0x9] sm:$0xff] }
 0x2e2   : > { %2598 = vmatprep.subr.mxu1 %v3242_v3  ;;  %2624 = vmatpush3.msra.mxu0 %v1328_v14  ;;  %v1486_v52 = vld [vmem:[#allocation3 + $0x5f8] sm:$0xff]  ;;  %v1485_v1 = vld [vmem:[#allocation3 + $0x5f0] sm:$0xff]  ;;  %v1472_v14 = vld [vmem:[#allocation3 + $0x588] sm:$0xff] }
 0x2e3   : > { %2599 = vmatpush3.msra.mxu1 %v1195_v2  ;;  %2625 = vmatprep.subr.mxu0 %v3242_v3  ;;  %v1484_v2 = vld [vmem:[#allocation3 + $0x5e8] sm:$0xff] }
 0x2e4   : > { %2600 = vmatprep.subr.mxu1 %v3242_v3  ;;  %2626 = vmatpush3.msra.mxu0 %v1327_v15  ;;  %v1471_v15 = vld [vmem:[#allocation3 + $0x580] sm:$0xff] }
 0x2e5   : > { %2601 = vmatpush3.msra.mxu1 %v1194_v4  ;;  %2627 = vmatprep.subr.mxu0 %v3242_v3  ;;  %v1483_v4 = vld [vmem:[#allocation3 + $0x5e0] sm:$0xff] }
 0x2e6   : > { %2602 = vmatprep.subr.mxu1 %v3242_v3  ;;  %2628 = vmatpush3.msra.mxu0 %v1326_v17  ;;  %v1614_v17 = vld [vmem:[#allocation3 + $0x6f8] sm:$0xff] }
 0x2e7   : > { %2603 = vmatpush3.msra.mxu1 %v1193_v5  ;;  %2629 = vmatprep.subr.mxu0 %v3242_v3 }
 0x2e8   : > { %2604 = vmatprep.subr.mxu1 %v3242_v3  ;;  %2630 = vmatpush3.msra.mxu0 %v1325_v20  ;;  %v1612_v20 = vld [vmem:[#allocation3 + $0x6e8] sm:$0xff] }
 0x2e9   : > { %2605 = vmatpush3.msra.mxu1 %v1192_v6  ;;  %2631 = vmatprep.subr.mxu0 %v3242_v3  ;;  %v1481_v6 = vld [vmem:[#allocation3 + $0x5d0] sm:$0xff] }
 0x2ea   : > { %2606 = vmatprep.subr.mxu1 %v3242_v3  ;;  %2632 = vmatpush3.msra.mxu0 %v1324_v22  ;;  %v1595_v22 = vld [vmem:[#allocation3 + $0x668] sm:$0xff] }
 0x2eb   : > { %2607 = vmatpush3.msra.mxu1 %v1191_v0  ;;  %2633 = vmatprep.subr.mxu0 %v3242_v3  ;;  %v1480_v0 = vld [vmem:[#allocation3 + $0x5c8] sm:$0xff] }
 0x2ec   : > { %2608 = vmatprep.subr.mxu1 %v3242_v3  ;;  %2634 = vmatpush3.msra.mxu0 %v1323_v24  ;;  %v1594_v24 = vld [vmem:[#allocation3 + $0x660] sm:$0xff] }
 0x2ed   : > { %2609 = vmatpush3.msra.mxu1 %v1190_v7  ;;  %2635 = vmatprep.subr.mxu0 %v3242_v3  ;;  %v1479_v7 = vld [vmem:[#allocation3 + $0x5c0] sm:$0xff] }
 0x2ee   : > { %2610 = vmatprep.subr.mxu1 %v3242_v3  ;;  %2636 = vmatpush3.msra.mxu0 %v1322_v25  ;;  %v1610_v25 = vld [vmem:[#allocation3 + $0x6d8] sm:$0xff] }
 0x2ef   : > { %2611 = vmatpush3.msra.mxu1 %v1189_v8  ;;  %2637 = vmatprep.subr.mxu0 %v3242_v3  ;;  %v1478_v8 = vld [vmem:[#allocation3 + $0x5b8] sm:$0xff] }
 0x2f0   : > { %2612 = vmatprep.subr.mxu1 %v3242_v3  ;;  %2638 = vmatpush3.msra.mxu0 %v1321_v26  ;;  %v1593_v26 = vld [vmem:[#allocation3 + $0x658] sm:$0xff] }
 0x2f1   : > { %2613 = vmatpush3.msra.mxu1 %v1188_v9  ;;  %2639 = vmatprep.subr.mxu0 %v3242_v3  ;;  %v1477_v9 = vld [vmem:[#allocation3 + $0x5b0] sm:$0xff] }
 0x2f2   : > { %2614 = vmatprep.subr.mxu1 %v3242_v3  ;;  %2640 = vmatpush3.msra.mxu0 %v1320_v27  ;;  %v1609_v27 = vld [vmem:[#allocation3 + $0x6d0] sm:$0xff] }
 0x2f3   : > { %2615 = vmatpush3.msra.mxu1 %v1187_v10  ;;  %2641 = vmatprep.subr.mxu0 %v3242_v3  ;;  %v1476_v10 = vld [vmem:[#allocation3 + $0x5a8] sm:$0xff] }
 0x2f4   : > { %2616 = vmatprep.subr.mxu1 %v3242_v3  ;;  %2642 = vmatpush3.msra.mxu0 %v1319_v28  ;;  %v1608_v28 = vld [vmem:[#allocation3 + $0x6c8] sm:$0xff] }
 0x2f5   : > { %2617 = vmatpush3.msra.mxu1 %v1186_v11  ;;  %2643 = vmatprep.subr.mxu0 %v3242_v3  ;;  %v1475_v11 = vld [vmem:[#allocation3 + $0x5a0] sm:$0xff] }
 0x2f6   : > { %2618 = vmatprep.subr.mxu1 %v3242_v3  ;;  %2644 = vmatpush3.msra.mxu0 %v1318_v30  ;;  %v1606_v30 = vld [vmem:[#allocation3 + $0x6b8] sm:$0xff] }
 0x2f7   : > { %2619 = vmatpush3.msra.mxu1 %v1185_v12  ;;  %2645 = vmatprep.subr.mxu0 %v3242_v3  ;;  %v1474_v12 = vld [vmem:[#allocation3 + $0x598] sm:$0xff] }
 0x2f8   : > { %2621 = vmatmul.mubr.f32.vlgmr.msra.gmra.mxu1 %v1183_v13  ;;  %2658 = vmatprep.subr.mxu1 %v3242_v3  ;;  %v1473_v13 = vld [vmem:[#allocation3 + $0x590] sm:$0xff] }
 0x2f9   : > { %2690 = vmatprep.mubr.msk.f32.mxu1 %vm2905_vm0, %v3242_v3  ;;  %2659 = vmatpush3.msra.mxu1 %v1311_v16 }
 0x2fa   : > { %2660 = vmatprep.subr.mxu1 %v3242_v3  ;;  %2646 = vmatpush3.msra.mxu0 %v1317_v32  ;;  %v1592_v32 = vld [vmem:[#allocation3 + $0x650] sm:$0xff] }
 0x2fb   : > { %2661 = vmatpush3.msra.mxu1 %v1310_v18  ;;  %2647 = vmatprep.subr.mxu0 %v3242_v3  ;;  %v1613_v18 = vld [vmem:[#allocation3 + $0x6f0] sm:$0xff] }
 0x2fc   : > { %2662 = vmatprep.subr.mxu1 %v3242_v3  ;;  %2648 = vmatpush3.msra.mxu0 %v1316_v34  ;;  %v1591_v34 = vld [vmem:[#allocation3 + $0x648] sm:$0xff] }
 0x2fd   : > { %2663 = vmatpush3.msra.mxu1 %v1309_v19  ;;  %2649 = vmatprep.subr.mxu0 %v3242_v3  ;;  %v1597_v19 = vld [vmem:[#allocation3 + $0x678] sm:$0xff] }
 0x2fe   : > { %2664 = vmatprep.subr.mxu1 %v3242_v3  ;;  %2650 = vmatpush3.msra.mxu0 %v1315_v36  ;;  %v1590_v36 = vld [vmem:[#allocation3 + $0x640] sm:$0xff] }
 0x2ff   : > { %2665 = vmatpush3.msra.mxu1 %v1308_v21  ;;  %2651 = vmatprep.subr.mxu0 %v3242_v3  ;;  %v1596_v21 = vld [vmem:[#allocation3 + $0x670] sm:$0xff] }
 0x300   : > { %2666 = vmatprep.subr.mxu1 %v3242_v3  ;;  %2652 = vmatpush3.msra.mxu0 %v1314_v38  ;;  %v1589_v38 = vld [vmem:[#allocation3 + $0x638] sm:$0xff] }
 0x301   : > { %2667 = vmatpush3.msra.mxu1 %v1307_v23  ;;  %2653 = vmatprep.subr.mxu0 %v3242_v3  ;;  %v1611_v23 = vld [vmem:[#allocation3 + $0x6e0] sm:$0xff] }
 0x302   : > { %2668 = vmatprep.subr.mxu1 %v3242_v3  ;;  %2654 = vmatpush3.msra.mxu0 %v1313_v40  ;;  %v1588_v40 = vld [vmem:[#allocation3 + $0x630] sm:$0xff] }
 0x303   : > { %2669 = vmatpush3.msra.mxu1 %v1306_v29  ;;  %2693 = vmatprep.subr.mxu0 %v3242_v3  ;;  %v1607_v29 = vld [vmem:[#allocation3 + $0x6c0] sm:$0xff] }
 0x304   : > { %2670 = vmatprep.subr.mxu1 %v3242_v3 }
 0x305   : > { %2671 = vmatpush3.msra.mxu1 %v1305_v31  ;;  %v1605_v31 = vld [vmem:[#allocation3 + $0x6b0] sm:$0xff] }
 0x306   : > { %2672 = vmatprep.subr.mxu1 %v3242_v3 }
 0x307   : > { %2673 = vmatpush3.msra.mxu1 %v1304_v33  ;;  %v1604_v33 = vld [vmem:[#allocation3 + $0x6a8] sm:$0xff] }
 0x308   : > { %2674 = vmatprep.subr.mxu1 %v3242_v3 }
 0x309   : > { %2675 = vmatpush3.msra.mxu1 %v1303_v35  ;;  %v1603_v35 = vld [vmem:[#allocation3 + $0x6a0] sm:$0xff] }
 0x30a   : > { %2676 = vmatprep.subr.mxu1 %v3242_v3 }
 0x30b   : > { %2677 = vmatpush3.msra.mxu1 %v1302_v37  ;;  %v1602_v37 = vld [vmem:[#allocation3 + $0x698] sm:$0xff] }
 0x30c   : > { %2678 = vmatprep.subr.mxu1 %v3242_v3 }
 0x30d   : > { %2679 = vmatpush3.msra.mxu1 %v1301_v39  ;;  %v1601_v39 = vld [vmem:[#allocation3 + $0x690] sm:$0xff] }
 0x30e   : > { %2680 = vmatprep.subr.mxu1 %v3242_v3 }
 0x30f   : > { %2681 = vmatpush3.msra.mxu1 %v1300_v41  ;;  %v1600_v41 = vld [vmem:[#allocation3 + $0x688] sm:$0xff] }
 0x310   : > { %2682 = vmatprep.subr.mxu1 %v3242_v3 }
 0x311   : > { %2683 = vmatpush3.msra.mxu1 %v1299_v42  ;;  %v1587_v42 = vld [vmem:[#allocation3 + $0x628] sm:$0xff] }
 0x312   : > { %2684 = vmatprep.subr.mxu1 %v3242_v3 }
 0x313   : > { %2685 = vmatpush3.msra.mxu1 %v1298_v43  ;;  %v1599_v43 = vld [vmem:[#allocation3 + $0x680] sm:$0xff] }
 0x314   : > { %2686 = vmatprep.subr.mxu1 %v3242_v3 }
 0x315   : > { %2687 = vmatpush3.msra.mxu1 %v1297_v44  ;;  %v1586_v44 = vld [vmem:[#allocation3 + $0x620] sm:$0xff] }
 0x316   : > { %2688 = vmatprep.subr.mxu1 %v3242_v3 }
 0x317   : > { %2689 = vmatpush3.msra.mxu1 %v1296_v45  ;;  %v1585_v45 = vld [vmem:[#allocation3 + $0x618] sm:$0xff] }
 0x318   : > { %2728 = vmatprep.subr.mxu1 %v3242_v3 }
 0x398   : > { %v1109_v46 = vpop.f32.mrf.mxu1 }
 0x39a   : > { %v2552_v47 = vpop.f32.mrf.mxu1 }
 0x39b   : > { %v1583_v47 = vld [vmem:[#allocation3 + $0x608] sm:$0xff] }
 0x3a0   : > { %v1179_v48 = vpop.f32.mrf.mxu0 }
 0x3a1   : > { %v1180_v50 = vadd.f32 %v1179_v48, %v1109_v46  ;;  %v1584_v46 = vld [vmem:[#allocation3 + $0x610] sm:$0xff]  ;;  %v1582_v48 = vld [vmem:[#allocation3 + $0x600] sm:$0xff] }
 0x3a2   : > { %v2587_v49 = vpop.f32.mrf.mxu0 }
 0x3b8   : > { %v1267_v51 = vpop.f32.mrf.mxu1 }
 0x3b9   : > { %v1271_v54 = vadd.f32 %v1267_v51, %v1180_v50 }
 0x3ba   : > { %v2622_v57 = vpop.f32.mrf.mxu1 }
 0x3bb   : > { %v1280_v58 = vmul.f32 %v1987_v53, %v1271_v54  ;;  %v1991_v57 = vld [vmem:[%s3408_s4 + $0x3] ss:$0 sm:$0xff] }
 0x3bd   : > { %v1289_v60 = vadd.f32 %v1989_v56, %v1280_v58 }
 0x3bf   : > { %v1290_v61 = vmul.f32 0.01, %v1289_v60 }
 0x3c1   : > { %v1291_v62 = vmax.f32 %v1289_v60, %v1290_v61  ;;  %v1993_v60 = vld [vmem:[%s3409_s5 + $0x3] ss:$0 sm:$0xff] }
 0x3c3   : > { %v3299_v63 = vadd.f32 %v1291_v62, %v3167_v55  ;;  %v1482_v55 = vld [vmem:[#allocation3 + $0x5d8] sm:$0xff] }
 0x3c5   : > { %2656 = vmatmul.mubr.f32.vlgmr.msra.gmra.mxu0 %v3299_v63  ;;  %1293 = vst [vmem:[#allocation2 + $0x8] sm:$0xff] %v3299_v63 }
 0x3c6   : > { %2694 = vmatpush3.msra.mxu0 %v1486_v52  ;;  %2725 = vmatprep.mubr.msk.f32.mxu0 %vm2905_vm0, %v3242_v3 }
 0x3c7   : > { %2695 = vmatprep.subr.mxu0 %v3242_v3 }
 0x3c8   : > { %2696 = vmatpush3.msra.mxu0 %v1485_v1 }
 0x3c9   : > { %2697 = vmatprep.subr.mxu0 %v3242_v3 }
 0x3ca   : > { %2698 = vmatpush3.msra.mxu0 %v1484_v2 }
 0x3cb   : > { %2699 = vmatprep.subr.mxu0 %v3242_v3 }
 0x3cc   : > { %2700 = vmatpush3.msra.mxu0 %v1483_v4  ;;  %v1294_v5 = vld [vmem:[#allocation2 + $0x4] sm:$0xff]  ;;  %v1469_v16 = vld [vmem:[#allocation2 + $0xc] sm:$0xff] }
 0x3cd   : > { %2701 = vmatprep.subr.mxu0 %v3242_v3  ;;  %2691 = vmatmul.mubr.f32.vlgmr.msra.gmra.mxu1 %v1294_v5  ;;  %v1771_v5 = vld [vmem:[#allocation3 + $0x770] sm:$0xff] }
 0x3ce   : > { %2702 = vmatpush3.msra.mxu0 %v1482_v55  ;;  %2760 = vmatprep.mubr.msk.f32.mxu1 %vm2905_vm0, %v3242_v3  ;;  %v1772_v55 = vld [vmem:[#allocation3 + $0x778] sm:$0xff] }
 0x3cf   : > { %2703 = vmatprep.subr.mxu0 %v3242_v3  ;;  %2729 = vmatpush3.msra.mxu1 %v1614_v17  ;;  %v1758_v17 = vld [vmem:[#allocation3 + $0x708] sm:$0xff] }
 0x3d0   : > { %2704 = vmatpush3.msra.mxu0 %v1481_v6  ;;  %2730 = vmatprep.subr.mxu1 %v3242_v3  ;;  %v1770_v6 = vld [vmem:[#allocation3 + $0x768] sm:$0xff] }
 0x3d1   : > { %2705 = vmatprep.subr.mxu0 %v3242_v3  ;;  %2731 = vmatpush3.msra.mxu1 %v1613_v18  ;;  %v1757_v18 = vld [vmem:[#allocation3 + $0x700] sm:$0xff] }
 0x3d2   : > { %2706 = vmatpush3.msra.mxu0 %v1480_v0  ;;  %2732 = vmatprep.subr.mxu1 %v3242_v3  ;;  %v1769_v0 = vld [vmem:[#allocation3 + $0x760] sm:$0xff] }
 0x3d3   : > { %2707 = vmatprep.subr.mxu0 %v3242_v3  ;;  %2733 = vmatpush3.msra.mxu1 %v1612_v20 }
 0x3d4   : > { %2708 = vmatpush3.msra.mxu0 %v1479_v7  ;;  %2734 = vmatprep.subr.mxu1 %v3242_v3  ;;  %v1768_v7 = vld [vmem:[#allocation3 + $0x758] sm:$0xff] }
 0x3d5   : > { %2709 = vmatprep.subr.mxu0 %v3242_v3  ;;  %2735 = vmatpush3.msra.mxu1 %v1611_v23 }
 0x3d6   : > { %2710 = vmatpush3.msra.mxu0 %v1478_v8  ;;  %2736 = vmatprep.subr.mxu1 %v3242_v3  ;;  %v1767_v8 = vld [vmem:[#allocation3 + $0x750] sm:$0xff] }
 0x3d7   : > { %2711 = vmatprep.subr.mxu0 %v3242_v3  ;;  %2737 = vmatpush3.msra.mxu1 %v1610_v25 }
 0x3d8   : > { %2712 = vmatpush3.msra.mxu0 %v1477_v9  ;;  %2738 = vmatprep.subr.mxu1 %v3242_v3  ;;  %v1766_v9 = vld [vmem:[#allocation3 + $0x748] sm:$0xff] }
 0x3d9   : > { %2713 = vmatprep.subr.mxu0 %v3242_v3  ;;  %2739 = vmatpush3.msra.mxu1 %v1609_v27 }
 0x3da   : > { %2714 = vmatpush3.msra.mxu0 %v1476_v10  ;;  %2740 = vmatprep.subr.mxu1 %v3242_v3  ;;  %v1765_v10 = vld [vmem:[#allocation3 + $0x740] sm:$0xff] }
 0x3db   : > { %2715 = vmatprep.subr.mxu0 %v3242_v3  ;;  %2741 = vmatpush3.msra.mxu1 %v1608_v28  ;;  %v1997_v28 = vld [vmem:[%s3409_s5 + $0x4] ss:$0 sm:$0xff] }
 0x3dc   : > { %2716 = vmatpush3.msra.mxu0 %v1475_v11  ;;  %2742 = vmatprep.subr.mxu1 %v3242_v3  ;;  %v1764_v11 = vld [vmem:[#allocation3 + $0x738] sm:$0xff] }
 0x3dd   : > { %2717 = vmatprep.subr.mxu0 %v3242_v3  ;;  %2743 = vmatpush3.msra.mxu1 %v1607_v29 }
 0x3de   : > { %2718 = vmatpush3.msra.mxu0 %v1474_v12  ;;  %2744 = vmatprep.subr.mxu1 %v3242_v3  ;;  %v1763_v12 = vld [vmem:[#allocation3 + $0x730] sm:$0xff] }
 0x3df   : > { %2719 = vmatprep.subr.mxu0 %v3242_v3  ;;  %2745 = vmatpush3.msra.mxu1 %v1606_v30 }
 0x3e0   : > { %2720 = vmatpush3.msra.mxu0 %v1473_v13  ;;  %2746 = vmatprep.subr.mxu1 %v3242_v3  ;;  %v1762_v13 = vld [vmem:[#allocation3 + $0x728] sm:$0xff] }
 0x3e1   : > { %2721 = vmatprep.subr.mxu0 %v3242_v3  ;;  %2747 = vmatpush3.msra.mxu1 %v1605_v31 }
 0x3e2   : > { %2722 = vmatpush3.msra.mxu0 %v1472_v14  ;;  %2748 = vmatprep.subr.mxu1 %v3242_v3  ;;  %v1761_v14 = vld [vmem:[#allocation3 + $0x720] sm:$0xff] }
 0x3e3   : > { %2723 = vmatprep.subr.mxu0 %v3242_v3  ;;  %2749 = vmatpush3.msra.mxu1 %v1604_v33 }
 0x3e4   : > { %2724 = vmatpush3.msra.mxu0 %v1471_v15  ;;  %2750 = vmatprep.subr.mxu1 %v3242_v3  ;;  %v1760_v15 = vld [vmem:[#allocation3 + $0x718] sm:$0xff] }
 0x3e5   : > { %2726 = vmatmul.mubr.f32.vlgmr.msra.gmra.mxu0 %v1469_v16  ;;  %2763 = vmatprep.subr.mxu0 %v3242_v3  ;;  %v1759_v16 = vld [vmem:[#allocation3 + $0x710] sm:$0xff] }
 0x3e6   : > { %2795 = vmatprep.mubr.msk.f32.mxu0 %vm2905_vm0, %v3242_v3  ;;  %2764 = vmatpush3.msra.mxu0 %v1597_v19 }
 0x3e7   : > { %2765 = vmatprep.subr.mxu0 %v3242_v3  ;;  %2751 = vmatpush3.msra.mxu1 %v1603_v35 }
 0x3e8   : > { %2766 = vmatpush3.msra.mxu0 %v1596_v21  ;;  %2752 = vmatprep.subr.mxu1 %v3242_v3 }
 0x3e9   : > { %2767 = vmatprep.subr.mxu0 %v3242_v3  ;;  %2753 = vmatpush3.msra.mxu1 %v1602_v37 }
 0x3ea   : > { %2768 = vmatpush3.msra.mxu0 %v1595_v22  ;;  %2754 = vmatprep.subr.mxu1 %v3242_v3 }
 0x3eb   : > { %2769 = vmatprep.subr.mxu0 %v3242_v3  ;;  %2755 = vmatpush3.msra.mxu1 %v1601_v39 }
 0x3ec   : > { %2770 = vmatpush3.msra.mxu0 %v1594_v24  ;;  %2756 = vmatprep.subr.mxu1 %v3242_v3 }
 0x3ed   : > { %2771 = vmatprep.subr.mxu0 %v3242_v3  ;;  %2757 = vmatpush3.msra.mxu1 %v1600_v41 }
 0x3ee   : > { %2772 = vmatpush3.msra.mxu0 %v1593_v26  ;;  %2758 = vmatprep.subr.mxu1 %v3242_v3  ;;  %v1995_v26 = vld [vmem:[%s3408_s4 + $0x4] ss:$0 sm:$0xff] }
 0x3ef   : > { %2773 = vmatprep.subr.mxu0 %v3242_v3  ;;  %2759 = vmatpush3.msra.mxu1 %v1599_v43  ;;  %v1998_v43 = vld [vmem:[%s3412_s8] ss:$0 sm:$0xff] }
 0x3f0   : > { %2774 = vmatpush3.msra.mxu0 %v1592_v32  ;;  %2798 = vmatprep.subr.mxu1 %v3242_v3 }
 0x3f1   : > { %2775 = vmatprep.subr.mxu0 %v3242_v3 }
 0x3f2   : > { %2776 = vmatpush3.msra.mxu0 %v1591_v34 }
 0x3f3   : > { %2777 = vmatprep.subr.mxu0 %v3242_v3 }
 0x3f4   : > { %2778 = vmatpush3.msra.mxu0 %v1590_v36 }
 0x3f5   : > { %2779 = vmatprep.subr.mxu0 %v3242_v3 }
 0x3f6   : > { %2780 = vmatpush3.msra.mxu0 %v1589_v38 }
 0x3f7   : > { %2781 = vmatprep.subr.mxu0 %v3242_v3 }
 0x3f8   : > { %2782 = vmatpush3.msra.mxu0 %v1588_v40 }
 0x3f9   : > { %2783 = vmatprep.subr.mxu0 %v3242_v3 }
 0x3fa   : > { %2784 = vmatpush3.msra.mxu0 %v1587_v42 }
 0x3fb   : > { %2785 = vmatprep.subr.mxu0 %v3242_v3 }
 0x3fc   : > { %2786 = vmatpush3.msra.mxu0 %v1586_v44 }
 0x3fd   : > { %2787 = vmatprep.subr.mxu0 %v3242_v3 }
 0x3fe   : > { %2788 = vmatpush3.msra.mxu0 %v1585_v45 }
 0x3ff   : > { %2789 = vmatprep.subr.mxu0 %v3242_v3 }
 0x400   : > { %2790 = vmatpush3.msra.mxu0 %v1584_v46 }
 0x401   : > { %2791 = vmatprep.subr.mxu0 %v3242_v3 }
 0x402   : > { %2792 = vmatpush3.msra.mxu0 %v1583_v47 }
 0x403   : > { %2793 = vmatprep.subr.mxu0 %v3242_v3 }
 0x404   : > { %2794 = vmatpush3.msra.mxu0 %v1582_v48 }
 0x485   : > { %v1395_v49 = vpop.f32.mrf.mxu0 }
 0x487   : > { %v2657_v50 = vpop.f32.mrf.mxu0 }
 0x48d   : > { %v1465_v51 = vpop.f32.mrf.mxu1 }
 0x48e   : > { %v1466_v54 = vadd.f32 %v1465_v51, %v1395_v49 }
 0x48f   : > { %v2692_v53 = vpop.f32.mrf.mxu1 }
 0x4a5   : > { %v1553_v56 = vpop.f32.mrf.mxu0 }
 0x4a6   : > { %v1557_v58 = vadd.f32 %v1553_v56, %v1466_v54 }
 0x4a7   : > { %v2727_v61 = vpop.f32.mrf.mxu0 }
 0x4a8   : > { %v1566_v62 = vmul.f32 %v1991_v57, %v1557_v58 }
 0x4aa   : > { %v1575_v52 = vadd.f32 %v1993_v60, %v1566_v62  ;;  %v1900_v60 = vld [vmem:[%s3410_s6] sm:$0xff] }
 0x4ab   : > { %v1902_v62 = vld [vmem:[%s3411_s7] sm:$0xff] }
 0x4ac   : > { %v1576_v1 = vmul.f32 0.01, %v1575_v52 }
 0x4ae   : > { %v1577_v2 = vmax.f32 %v1575_v52, %v1576_v1 }
 0x4b0   : > { %v1578_v4 = vadd.f32 %v1577_v2, %v3232_v59 }
 0x4b2   : > { %2761 = vmatmul.mubr.f32.vlgmr.msra.gmra.mxu1 %v1578_v4  ;;  %1579 = vst [vmem:[#allocation2 + $0x8] sm:$0xff] %v1578_v4 }
 0x4b3   : > { %2799 = vmatpush3.msra.mxu1 %v1772_v55  ;;  %2830 = vmatprep.mubr.msk.f32.mxu1 %vm2905_vm0, %v3242_v3 }
 0x4b4   : > { %2800 = vmatprep.subr.mxu1 %v3242_v3 }
 0x4b5   : > { %2801 = vmatpush3.msra.mxu1 %v1771_v5 }
 0x4b6   : > { %2802 = vmatprep.subr.mxu1 %v3242_v3 }
 0x4b7   : > { %2803 = vmatpush3.msra.mxu1 %v1770_v6 }
 0x4b8   : > { %2804 = vmatprep.subr.mxu1 %v3242_v3 }
 0x4b9   : > { %2805 = vmatpush3.msra.mxu1 %v1769_v0  ;;  %v1580_v59 = vld [vmem:[#allocation2 + $0x7] sm:$0xff] }
 0x4ba   : > { %2806 = vmatprep.subr.mxu1 %v3242_v3  ;;  %2796 = vmatmul.mubr.f32.vlgmr.msra.gmra.mxu0 %v1580_v59  ;;  %v1755_v19 = vld [vmem:[#allocation2 + $0x9] sm:$0xff] }
 0x4bb   : > { %2807 = vmatpush3.msra.mxu1 %v1768_v7 }
 0x4bc   : > { %2808 = vmatprep.subr.mxu1 %v3242_v3 }
 0x4bd   : > { %2809 = vmatpush3.msra.mxu1 %v1767_v8 }
 0x4be   : > { %2810 = vmatprep.subr.mxu1 %v3242_v3 }
 0x4bf   : > { %2811 = vmatpush3.msra.mxu1 %v1766_v9 }
 0x4c0   : > { %2812 = vmatprep.subr.mxu1 %v3242_v3 }
 0x4c1   : > { %2813 = vmatpush3.msra.mxu1 %v1765_v10 }
 0x4c2   : > { %2814 = vmatprep.subr.mxu1 %v3242_v3 }
 0x4c3   : > { %2815 = vmatpush3.msra.mxu1 %v1764_v11 }
 0x4c4   : > { %2816 = vmatprep.subr.mxu1 %v3242_v3 }
 0x4c5   : > { %2817 = vmatpush3.msra.mxu1 %v1763_v12 }
 0x4c6   : > { %2818 = vmatprep.subr.mxu1 %v3242_v3 }
 0x4c7   : > { %2819 = vmatpush3.msra.mxu1 %v1762_v13 }
 0x4c8   : > { %2820 = vmatprep.subr.mxu1 %v3242_v3 }
 0x4c9   : > { %2821 = vmatpush3.msra.mxu1 %v1761_v14 }
 0x4ca   : > { %2822 = vmatprep.subr.mxu1 %v3242_v3 }
 0x4cb   : > { %2823 = vmatpush3.msra.mxu1 %v1760_v15 }
 0x4cc   : > { %2824 = vmatprep.subr.mxu1 %v3242_v3 }
 0x4cd   : > { %2825 = vmatpush3.msra.mxu1 %v1759_v16 }
 0x4ce   : > { %2826 = vmatprep.subr.mxu1 %v3242_v3 }
 0x4cf   : > { %2827 = vmatpush3.msra.mxu1 %v1758_v17 }
 0x4d0   : > { %2828 = vmatprep.subr.mxu1 %v3242_v3 }
 0x4d1   : > { %2829 = vmatpush3.msra.mxu1 %v1757_v18 }
 0x4d2   : > { %2831 = vmatmul.mubr.f32.vlgmr.msra.gmra.mxu1 %v1755_v19 }
 0x572   : > { %v1681_v20 = vpop.f32.mrf.mxu1 }
 0x574   : > { %v2762_v21 = vpop.f32.mrf.mxu1 }
 0x57a   : > { %v1751_v22 = vpop.f32.mrf.mxu0 }
 0x57b   : > { %v1752_v24 = vadd.f32 %v1751_v22, %v1681_v20 }
 0x57c   : > { %v2797_v23 = vpop.f32.mrf.mxu0 }
 0x592   : > { %v1839_v25 = vpop.f32.mrf.mxu1 }
 0x593   : > { %v1843_v27 = vadd.f32 %v1839_v25, %v1752_v24 }
 0x594   : > { %v2832_v29 = vpop.f32.mrf.mxu1 }
 0x595   : > { %v1852_v3 = vmul.f32 %v1995_v26, %v1843_v27 }
 0x597   : > { %v1861_v30 = vadd.f32 %v1997_v28, %v1852_v3 }
 0x599   : > { %v1862_v31 = vmul.f32 0.01, %v1861_v30 }
 0x59b   : > { %v1863_v32 = vmax.f32 %v1861_v30, %v1862_v31 }
 0x59d   : > { %v1864_v33 = vadd.f32 %v1863_v32, %v3299_v63 }
 0x59f   : > { %1865 = vadd.xlane.f32.xlu0 %v1864_v33 }
 0x628   : > { %v1866_v34 = vpop.xlane.xlu0 %1865 }
 0x629   : > { %v1867_v35 = vrot.slane %v1866_v34, 4 }
 0x62b   : > { %v1868_v36 = vadd.f32 %v1867_v35, %v1866_v34 }
 0x62d   : > { %v1869_v37 = vrot.slane %v1868_v36, 2 }
 0x62f   : > { %v1870_v38 = vadd.f32 %v1869_v37, %v1868_v36 }
 0x631   : > { %v1871_v39 = vrot.slane %v1870_v38, 1 }
 0x633   : > { %v1872_v40 = vadd.f32 %v1871_v39, %v1870_v38 }
 0x635   : > { %2833 = vpush %v1872_v40 }
 0x666   : > { %s2834_s21 = spop %2833 }
 0x667   : > { %v1874_v41 = vstv %s2834_s21 }
 0x668   : > { %v1875_v42 = vmul.f32 0.001953125, %v1874_v41 }
 0x66a   : > { %v1876_v44 = vsub.f32 %v1864_v33, %v1875_v42 }
 0x66c   : > { %v1884_v45 = vmul.f32 %v1998_v43, %v1876_v44 }
 0x66e   : > { %v1885_v46 = vmul.f32 %v1884_v45, %v1884_v45 }
 0x670   : > { %1886 = vadd.xlane.f32.xlu0 %v1885_v46 }
 0x6f9   : > { %v1887_v63 = vpop.xlane.xlu0 %1886 }
 0x6fa   : > { %v1888_v47 = vrot.slane %v1887_v63, 4 }
 0x6fc   : > { %v1889_v48 = vadd.f32 %v1888_v47, %v1887_v63 }
 0x6fe   : > { %v1890_v49 = vrot.slane %v1889_v48, 2 }
 0x700   : > { %v1891_v50 = vadd.f32 %v1890_v49, %v1889_v48 }
 0x702   : > { %v1892_v51 = vrot.slane %v1891_v50, 1 }
 0x704   : > { %v1893_v53 = vadd.f32 %v1892_v51, %v1891_v50 }
 0x706   : > { %2835 = vpush %v1893_v53 }
 0x737   : > { %s2836_s24 = spop %2835 }
 0x738   : > { %v1895_v54 = vstv %s2836_s24 }
 0x739   : > { %v1896_v56 = vmul.f32 0.001953125, %v1895_v54 }
 0x73b   : > { %v1897_v57 = vadd.f32 1e-05, %v1896_v56 }
 0x73d   : > { %2860 = vrsqrt.f32 %v1897_v57 }
 0x74a   : > { %v2861_v58 = vpop.eup %2860 }
 0x74b   : > { %v1899_v61 = vmul.f32 %v2861_v58, %v1884_v45 }
 0x74d   : > { %v1901_v52 = vmul.f32 %v1900_v60, %v1899_v61 }
 0x74f   : > { %v1903_v1 = vadd.f32 %v1902_v62, %v1901_v52 }
 0x751   : > { %1904 = vst [vmem:[%s342_s13] sm:$0xff] %v1903_v1 }
 0x752 PF: > { %s20_s30 = sadd.s32 1, %s2899_s30  }
 0x753   : > { %p17_p1 = scmp.ge.s32.totalorder %s20_s30, 4  }
 0x755   :  { %19 = sbr.rel (!%p17_p1) target bundleno = 1 (0x1), region = 113 }
 0x75a   :  { %1924 = vsyncpa [#allocation4], 1 }
 0x75b   :  { %1926 = vsyncpa [#allocation4 + $0x1], 1 }

</bundles_post_ra>
